<compile_context>
chip_gen: v7x
topology: tpu7x:2x2x1
jax: 0.10.0
libtpu: 0.0.40
codegen_flags: <defaults>
</compile_context>

<pallas_src>
import jax
import jax.numpy as jnp
import numpy as np
from jax.experimental import pallas as pl
from jax.experimental.pallas import tpu as pltpu

# --- small synthetic GPT-2 config (same structure as gpt2, tiny sizes) -------
SEQ = 8          # sequence length
DMODEL = 32      # hidden size
NHEAD = 4        # attention heads
HEAD_DIM = DMODEL // NHEAD
DFF = 4 * DMODEL # MLP inner size (GPT-2 uses 4*hidden)
NLAYER = 2
VOCAB = 64
MAX_POS = 32
LN_EPS = 1e-5
GELU_C = 0.7978845608028654   # sqrt(2/pi), HF gelu_new
NEG_INF = -1e9


def _layer_norm(h, g, b):
    mu = jnp.mean(h, axis=-1, keepdims=True)
    var = jnp.mean((h - mu) ** 2, axis=-1, keepdims=True)
    return (h - mu) * jax.lax.rsqrt(var + LN_EPS) * g + b


# ---------------------------------------------------------------------------
# Fused kernel: the whole layer stack in one invocation (grid=()).
# ---------------------------------------------------------------------------
def gpt2_stack_kernel(x_ref, mask_ref,
                      ln1g_ref, ln1b_ref,
                      wqkv_ref, bqkv_ref,
                      wo_ref, bo_ref,
                      ln2g_ref, ln2b_ref,
                      wfc_ref, bfc_ref,
                      wp_ref, bp_ref,
                      out_ref):
    x = x_ref[...]          # (SEQ, DMODEL) f32 running hidden state
    mask = mask_ref[...]    # (SEQ, SEQ) f32 additive causal bias
    scale = 1.0 / (HEAD_DIM ** 0.5)

    # Fully-unrolled static layer loop; all stacked weights stay resident in VMEM.
    for li in range(NLAYER):
        # ---- ln_1 + fused QKV projection (one lane-dense matmul, depth=DMODEL) ----
        h = _layer_norm(x, ln1g_ref[li], ln1b_ref[li])
        qkv = jnp.dot(h.astype(jnp.bfloat16), wqkv_ref[li],
                      preferred_element_type=jnp.float32) + bqkv_ref[li]   # (SEQ, 3*DMODEL)

        # Head split via static lane slices stacked on a leading (batch) axis —
        # no transposes/relayouts of activations inside the kernel.
        def heads(base):
            return jnp.stack(
                [qkv[:, base + hh * HEAD_DIM: base + (hh + 1) * HEAD_DIM]
                 for hh in range(NHEAD)], axis=0)            # (NHEAD, SEQ, HEAD_DIM)

        qh, kh, vh = heads(0), heads(DMODEL), heads(2 * DMODEL)

        # Batched (head-leading) attention. Softmax kept in f32 with exact divide.
        s = jnp.einsum("hqd,hkd->hqk", qh, kh,
                       preferred_element_type=jnp.float32) * scale + mask[None]
        s = s - jnp.max(s, axis=-1, keepdims=True)
        e = jnp.exp(s)
        p = e / jnp.sum(e, axis=-1, keepdims=True)

        ctx = jnp.einsum("hqk,hkd->hqd", p, vh,
                         preferred_element_type=jnp.float32)  # (NHEAD, SEQ, HEAD_DIM)

        # Merge heads back onto the lane-dense hidden axis, then one full-depth
        # (contraction = DMODEL) output-projection matmul.
        ctx2d = jnp.concatenate([ctx[hh] for hh in range(NHEAD)], axis=-1)  # (SEQ, DMODEL)
        attn_out = jnp.dot(ctx2d.astype(jnp.bfloat16), wo_ref[li],
                           preferred_element_type=jnp.float32) + bo_ref[li]

        hidden = x + attn_out                                 # residual

        # ---- ln_2 + MLP (gelu_new, matching HF GPT-2) ----
        h2 = _layer_norm(hidden, ln2g_ref[li], ln2b_ref[li])
        fc = jnp.dot(h2.astype(jnp.bfloat16), wfc_ref[li],
                     preferred_element_type=jnp.float32) + bfc_ref[li]
        g = 0.5 * fc * (1.0 + jnp.tanh(GELU_C * (fc + 0.044715 * fc * fc * fc)))
        mlp_out = jnp.dot(g.astype(jnp.bfloat16), wp_ref[li],
                          preferred_element_type=jnp.float32) + bp_ref[li]

        block_out = hidden + mlp_out

        # Single lane-dense (SEQ, 3*DMODEL) store per layer: [attn | mlp | block].
        out_ref[li] = jnp.concatenate([attn_out, mlp_out, block_out], axis=-1)
        x = block_out


# ---------------------------------------------------------------------------
# Wrapper: one pallas_call for the whole stack of layers (everything in VMEM).
# ---------------------------------------------------------------------------
def gpt2_layers_pallas(hidden0, mask_bias, packed):
    vmem = pl.BlockSpec(memory_space=pltpu.MemorySpace.VMEM)
    return pl.pallas_call(
        gpt2_stack_kernel,
        out_shape=jax.ShapeDtypeStruct((NLAYER, SEQ, 3 * DMODEL), jnp.float32),
        in_specs=[vmem] * 14,
        out_specs=vmem,
    )(hidden0, mask_bias,
      packed["ln1_g"], packed["ln1_b"],
      packed["w_qkv"], packed["b_qkv"],
      packed["w_attn_proj"], packed["b_attn_proj"],
      packed["ln2_g"], packed["ln2_b"],
      packed["w_fc"], packed["b_fc"],
      packed["w_proj"], packed["b_proj"])


# ---------------------------------------------------------------------------
# Parameter construction (HF-style layout) and packing for the kernel.
# ---------------------------------------------------------------------------
def make_params(key):
    """Deterministic synthetic GPT-2 weights (normal*0.02, zero biases, LN=1/0)."""
    def nrm(k, shape):
        return (0.02 * jax.random.normal(k, shape)).astype(jnp.float32)

    keys = jax.random.split(key, 2 + NLAYER)
    wte = nrm(keys[0], (VOCAB, DMODEL))
    wpe = nrm(keys[1], (MAX_POS, DMODEL))

    layers = []
    for li in range(NLAYER):
        lk = jax.random.split(keys[2 + li], 4)
        layers.append({
            "ln1_g": jnp.ones((1, DMODEL), jnp.float32),
            "ln1_b": jnp.zeros((1, DMODEL), jnp.float32),
            "w_qkv": nrm(lk[0], (DMODEL, 3 * DMODEL)),        # Conv1D: y = x @ W + b
            "b_qkv": jnp.zeros((1, 3 * DMODEL), jnp.float32),
            "w_attn_proj": nrm(lk[1], (DMODEL, DMODEL)),
            "b_attn_proj": jnp.zeros((1, DMODEL), jnp.float32),
            "ln2_g": jnp.ones((1, DMODEL), jnp.float32),
            "ln2_b": jnp.zeros((1, DMODEL), jnp.float32),
            "w_fc": nrm(lk[2], (DMODEL, DFF)),
            "b_fc": jnp.zeros((1, DFF), jnp.float32),
            "w_mlp_proj": nrm(lk[3], (DFF, DMODEL)),
            "b_mlp_proj": jnp.zeros((1, DMODEL), jnp.float32),
        })
    return wte, wpe, layers


def pack_layer_params(layers):
    """Stack per-layer params on a leading layer axis; weight matrices in bf16,
    biases / layernorm params stay f32 (elementwise math is done in f32)."""
    def stack(name, dtype=None):
        arr = jnp.stack([p[name] for p in layers], axis=0)
        return arr.astype(dtype) if dtype is not None else arr

    return {
        "ln1_g": stack("ln1_g"), "ln1_b": stack("ln1_b"),
        "w_qkv": stack("w_qkv", jnp.bfloat16),                # (NLAYER, DMODEL, 3*DMODEL)
        "b_qkv": stack("b_qkv"),
        "w_attn_proj": stack("w_attn_proj", jnp.bfloat16),    # (NLAYER, DMODEL, DMODEL)
        "b_attn_proj": stack("b_attn_proj"),
        "ln2_g": stack("ln2_g"), "ln2_b": stack("ln2_b"),
        "w_fc": stack("w_fc", jnp.bfloat16),                  # (NLAYER, DMODEL, DFF)
        "b_fc": stack("b_fc"),
        "w_proj": stack("w_mlp_proj", jnp.bfloat16),          # (NLAYER, DFF, DMODEL)
        "b_proj": stack("b_mlp_proj"),
    }


# ---------------------------------------------------------------------------
# Pure-JAX f32 reference (HF GPT-2 block semantics) for correctness checking.
# ---------------------------------------------------------------------------
def ref_forward(hidden0, layers):
    x = hidden0
    causal = jnp.tril(jnp.ones((SEQ, SEQ), dtype=bool))
    attn_l, mlp_l, blk_l = [], [], []
    for p in layers:
        h = _layer_norm(x, p["ln1_g"], p["ln1_b"])
        qkv = h @ p["w_qkv"] + p["b_qkv"]
        q, k, v = jnp.split(qkv, 3, axis=-1)

        def heads(t):
            return t.reshape(SEQ, NHEAD, HEAD_DIM).transpose(1, 0, 2)

        qh, kh, vh = heads(q), heads(k), heads(v)
        s = jnp.einsum("hqd,hkd->hqk", qh, kh) / (HEAD_DIM ** 0.5)
        s = jnp.where(causal[None], s, NEG_INF)
        pw = jax.nn.softmax(s, axis=-1)
        ctx = jnp.einsum("hqk,hkd->hqd", pw, vh).transpose(1, 0, 2).reshape(SEQ, DMODEL)
        attn_out = ctx @ p["w_attn_proj"] + p["b_attn_proj"]
        hidden = x + attn_out
        h2 = _layer_norm(hidden, p["ln2_g"], p["ln2_b"])
        fc = h2 @ p["w_fc"] + p["b_fc"]
        g = 0.5 * fc * (1.0 + jnp.tanh(GELU_C * (fc + 0.044715 * fc ** 3)))
        mlp_out = g @ p["w_mlp_proj"] + p["b_mlp_proj"]
        blk = hidden + mlp_out
        attn_l.append(attn_out); mlp_l.append(mlp_out); blk_l.append(blk)
        x = blk
    return jnp.stack(attn_l), jnp.stack(mlp_l), jnp.stack(blk_l)


# ---------------------------------------------------------------------------
def gpt2_forward(token_ids, wte, wpe, packed):
    """token_ids: (1, SEQ) int32 -> (NLAYER, SEQ, 3*DMODEL) slab [attn|mlp|block]."""
    ids = token_ids[0]
    hidden0 = wte[ids] + wpe[jnp.arange(SEQ)]             # embedding glue (plain JAX)
    rows = jnp.arange(SEQ)[:, None]
    cols = jnp.arange(SEQ)[None, :]
    mask_bias = jnp.where(rows >= cols, 0.0, NEG_INF).astype(jnp.float32)
    return gpt2_layers_pallas(hidden0, mask_bias, packed)


if __name__ == "__main__":
    key = jax.random.PRNGKey(0)
    k_tok, k_param = jax.random.split(key)
    token_ids = jax.random.randint(k_tok, (1, SEQ), 0, VOCAB, dtype=jnp.int32)
    wte, wpe, layers = make_params(k_param)
    packed = pack_layer_params(layers)

    out = jax.jit(gpt2_forward)(token_ids, wte, wpe, packed)
    out = jax.block_until_ready(out)
    assert out.shape == (NLAYER, SEQ, 3 * DMODEL)

    attn = out[:, :, 0:DMODEL]
    mlp = out[:, :, DMODEL:2 * DMODEL]
    blk = out[:, :, 2 * DMODEL:3 * DMODEL]

    # correctness check against pure-JAX f32 reference (tolerance covers bf16 weights)
    hidden0 = wte[token_ids[0]] + wpe[jnp.arange(SEQ)]
    ref_attn, ref_mlp, ref_blk = ref_forward(hidden0, layers)
    np.testing.assert_allclose(np.asarray(attn), np.asarray(ref_attn), rtol=2e-2, atol=2e-3)
    np.testing.assert_allclose(np.asarray(mlp), np.asarray(ref_mlp), rtol=2e-2, atol=2e-3)
    np.testing.assert_allclose(np.asarray(blk), np.asarray(ref_blk), rtol=2e-2, atol=2e-3)

    # mirror the PyTorch module's output structure (list per layer, batch dim 1)
    result = {
        "attn": [attn[l][None] for l in range(NLAYER)],
        "mlp": [mlp[l][None] for l in range(NLAYER)],
        "block": [blk[l][None] for l in range(NLAYER)],
    }
    # TODO(synk): tokenizer / token_texts (string processing) have no Pallas equivalent.
    assert result["block"][0].shape == (1, SEQ, DMODEL)
    print("KERNEL_OK")
</pallas_src>

<mosaic_0001>
module attributes {stable_mosaic.version = 11 : i64} {
  func.func @gpt2_stack_kernel(%arg0: memref<8x32xf32, #tpu.memory_space<vmem>>, %arg1: memref<8x8xf32, #tpu.memory_space<vmem>>, %arg2: memref<2x1x32xf32, #tpu.memory_space<vmem>>, %arg3: memref<2x1x32xf32, #tpu.memory_space<vmem>>, %arg4: memref<2x32x96xbf16, #tpu.memory_space<vmem>>, %arg5: memref<2x1x96xf32, #tpu.memory_space<vmem>>, %arg6: memref<2x32x32xbf16, #tpu.memory_space<vmem>>, %arg7: memref<2x1x32xf32, #tpu.memory_space<vmem>>, %arg8: memref<2x1x32xf32, #tpu.memory_space<vmem>>, %arg9: memref<2x1x32xf32, #tpu.memory_space<vmem>>, %arg10: memref<2x32x128xbf16, #tpu.memory_space<vmem>>, %arg11: memref<2x1x128xf32, #tpu.memory_space<vmem>>, %arg12: memref<2x128x32xbf16, #tpu.memory_space<vmem>>, %arg13: memref<2x1x32xf32, #tpu.memory_space<vmem>>, %arg14: memref<2x8x96xf32, #tpu.memory_space<vmem>>) attributes {dimension_semantics = [], scalar_prefetch = 0 : i64, scratch_operands = 0 : i64, tpu.core_type = #tpu.core_type<tc>} {
    %c0 = arith.constant 0 : index
    %c0_0 = arith.constant 0 : index
    %0 = vector.load %arg0[%c0, %c0_0] : memref<8x32xf32, #tpu.memory_space<vmem>>, vector<8x32xf32>
    %c0_1 = arith.constant 0 : index
    %c0_2 = arith.constant 0 : index
    %1 = vector.load %arg1[%c0_1, %c0_2] : memref<8x8xf32, #tpu.memory_space<vmem>>, vector<8x8xf32>
    %c0_3 = arith.constant 0 : index
    %c0_4 = arith.constant 0 : index
    %c0_5 = arith.constant 0 : index
    %2 = vector.load %arg2[%c0_3, %c0_4, %c0_5] : memref<2x1x32xf32, #tpu.memory_space<vmem>>, vector<1x1x32xf32>
    %3 = vector.shape_cast %2 : vector<1x1x32xf32> to vector<1x32xf32>
    %c0_6 = arith.constant 0 : index
    %c0_7 = arith.constant 0 : index
    %c0_8 = arith.constant 0 : index
    %4 = vector.load %arg3[%c0_6, %c0_7, %c0_8] : memref<2x1x32xf32, #tpu.memory_space<vmem>>, vector<1x1x32xf32>
    %5 = vector.shape_cast %4 : vector<1x1x32xf32> to vector<1x32xf32>
    %cst = arith.constant dense<0.000000e+00> : vector<8xf32>
    %6 = vector.multi_reduction <add>, %0, %cst [1] : vector<8x32xf32> to vector<8xf32>
    %7 = vector.shape_cast %6 : vector<8xf32> to vector<8x1xf32>
    %cst_9 = arith.constant 3.200000e+01 : f32
    %8 = vector.broadcast %cst_9 : f32 to vector<8x1xf32>
    %9 = arith.divf %7, %8 : vector<8x1xf32>
    %10 = vector.broadcast %9 : vector<8x1xf32> to vector<8x32xf32>
    %11 = arith.subf %0, %10 : vector<8x32xf32>
    %12 = arith.mulf %11, %11 : vector<8x32xf32>
    %cst_10 = arith.constant dense<0.000000e+00> : vector<8xf32>
    %13 = vector.multi_reduction <add>, %12, %cst_10 [1] : vector<8x32xf32> to vector<8xf32>
    %14 = vector.shape_cast %13 : vector<8xf32> to vector<8x1xf32>
    %cst_11 = arith.constant 3.200000e+01 : f32
    %15 = vector.broadcast %cst_11 : f32 to vector<8x1xf32>
    %16 = arith.divf %14, %15 : vector<8x1xf32>
    %17 = vector.broadcast %9 : vector<8x1xf32> to vector<8x32xf32>
    %18 = arith.subf %0, %17 : vector<8x32xf32>
    %cst_12 = arith.constant 9.99999974E-6 : f32
    %19 = vector.broadcast %cst_12 : f32 to vector<8x1xf32>
    %20 = arith.addf %16, %19 : vector<8x1xf32>
    %21 = math.rsqrt %20 : vector<8x1xf32>
    %22 = vector.broadcast %21 : vector<8x1xf32> to vector<8x32xf32>
    %23 = arith.mulf %18, %22 : vector<8x32xf32>
    %24 = vector.broadcast %3 : vector<1x32xf32> to vector<8x32xf32>
    %25 = arith.mulf %23, %24 : vector<8x32xf32>
    %26 = vector.broadcast %5 : vector<1x32xf32> to vector<8x32xf32>
    %27 = arith.addf %25, %26 : vector<8x32xf32>
    %28 = arith.truncf %27 : vector<8x32xf32> to vector<8x32xbf16>
    %c0_13 = arith.constant 0 : index
    %c0_14 = arith.constant 0 : index
    %c0_15 = arith.constant 0 : index
    %29 = vector.load %arg4[%c0_13, %c0_14, %c0_15] : memref<2x32x96xbf16, #tpu.memory_space<vmem>>, vector<1x32x96xbf16>
    %30 = vector.shape_cast %29 : vector<1x32x96xbf16> to vector<32x96xbf16>
    %cst_16 = arith.constant dense<0.000000e+00> : vector<8x96xf32>
    %31 = tpu.matmul %28, %30, %cst_16 {dimension_numbers = #tpu.dot_dimension_numbers<[1], [0], [0], [1], [0, 0, 1, 1], [], []>} : vector<8x32xbf16>, vector<32x96xbf16>, vector<8x96xf32> -> vector<8x96xf32>
    %c0_17 = arith.constant 0 : index
    %c0_18 = arith.constant 0 : index
    %c0_19 = arith.constant 0 : index
    %32 = vector.load %arg5[%c0_17, %c0_18, %c0_19] : memref<2x1x96xf32, #tpu.memory_space<vmem>>, vector<1x1x96xf32>
    %33 = vector.shape_cast %32 : vector<1x1x96xf32> to vector<1x96xf32>
    %34 = vector.broadcast %33 : vector<1x96xf32> to vector<8x96xf32>
    %35 = arith.addf %31, %34 : vector<8x96xf32>
    %36 = vector.extract_strided_slice %35 {offsets = [0, 0], sizes = [8, 8], strides = [1, 1]} : vector<8x96xf32> to vector<8x8xf32>
    %37 = vector.extract_strided_slice %35 {offsets = [0, 8], sizes = [8, 8], strides = [1, 1]} : vector<8x96xf32> to vector<8x8xf32>
    %38 = vector.extract_strided_slice %35 {offsets = [0, 16], sizes = [8, 8], strides = [1, 1]} : vector<8x96xf32> to vector<8x8xf32>
    %39 = vector.extract_strided_slice %35 {offsets = [0, 24], sizes = [8, 8], strides = [1, 1]} : vector<8x96xf32> to vector<8x8xf32>
    %40 = vector.shape_cast %36 : vector<8x8xf32> to vector<1x8x8xf32>
    %41 = vector.shape_cast %37 : vector<8x8xf32> to vector<1x8x8xf32>
    %42 = vector.shape_cast %38 : vector<8x8xf32> to vector<1x8x8xf32>
    %43 = vector.shape_cast %39 : vector<8x8xf32> to vector<1x8x8xf32>
    %44 = tpu.concatenate %40, %41, %42, %43 in 0 : vector<1x8x8xf32>, vector<1x8x8xf32>, vector<1x8x8xf32>, vector<1x8x8xf32> -> vector<4x8x8xf32>
    %45 = vector.extract_strided_slice %35 {offsets = [0, 32], sizes = [8, 8], strides = [1, 1]} : vector<8x96xf32> to vector<8x8xf32>
    %46 = vector.extract_strided_slice %35 {offsets = [0, 40], sizes = [8, 8], strides = [1, 1]} : vector<8x96xf32> to vector<8x8xf32>
    %47 = vector.extract_strided_slice %35 {offsets = [0, 48], sizes = [8, 8], strides = [1, 1]} : vector<8x96xf32> to vector<8x8xf32>
    %48 = vector.extract_strided_slice %35 {offsets = [0, 56], sizes = [8, 8], strides = [1, 1]} : vector<8x96xf32> to vector<8x8xf32>
    %49 = vector.shape_cast %45 : vector<8x8xf32> to vector<1x8x8xf32>
    %50 = vector.shape_cast %46 : vector<8x8xf32> to vector<1x8x8xf32>
    %51 = vector.shape_cast %47 : vector<8x8xf32> to vector<1x8x8xf32>
    %52 = vector.shape_cast %48 : vector<8x8xf32> to vector<1x8x8xf32>
    %53 = tpu.concatenate %49, %50, %51, %52 in 0 : vector<1x8x8xf32>, vector<1x8x8xf32>, vector<1x8x8xf32>, vector<1x8x8xf32> -> vector<4x8x8xf32>
    %54 = vector.extract_strided_slice %35 {offsets = [0, 64], sizes = [8, 8], strides = [1, 1]} : vector<8x96xf32> to vector<8x8xf32>
    %55 = vector.extract_strided_slice %35 {offsets = [0, 72], sizes = [8, 8], strides = [1, 1]} : vector<8x96xf32> to vector<8x8xf32>
    %56 = vector.extract_strided_slice %35 {offsets = [0, 80], sizes = [8, 8], strides = [1, 1]} : vector<8x96xf32> to vector<8x8xf32>
    %57 = vector.extract_strided_slice %35 {offsets = [0, 88], sizes = [8, 8], strides = [1, 1]} : vector<8x96xf32> to vector<8x8xf32>
    %58 = vector.shape_cast %54 : vector<8x8xf32> to vector<1x8x8xf32>
    %59 = vector.shape_cast %55 : vector<8x8xf32> to vector<1x8x8xf32>
    %60 = vector.shape_cast %56 : vector<8x8xf32> to vector<1x8x8xf32>
    %61 = vector.shape_cast %57 : vector<8x8xf32> to vector<1x8x8xf32>
    %62 = tpu.concatenate %58, %59, %60, %61 in 0 : vector<1x8x8xf32>, vector<1x8x8xf32>, vector<1x8x8xf32>, vector<1x8x8xf32> -> vector<4x8x8xf32>
    "tpu.trace_start"() <{level = 10 : i32, message = "hqd,hkd->hqk"}> : () -> ()
    %cst_20 = arith.constant dense<0.000000e+00> : vector<4x8x8xf32>
    %63 = tpu.matmul %44, %53, %cst_20 {dimension_numbers = #tpu.dot_dimension_numbers<[2], [2], [1], [1], [0, 0, 0, 1, 1, 1], [0], [0]>} : vector<4x8x8xf32>, vector<4x8x8xf32>, vector<4x8x8xf32> -> vector<4x8x8xf32>
    "tpu.trace_stop"() : () -> ()
    %cst_21 = arith.constant 0.353553385 : f32
    %64 = vector.broadcast %cst_21 : f32 to vector<4x8x8xf32>
    %65 = arith.mulf %63, %64 : vector<4x8x8xf32>
    %66 = vector.shape_cast %1 : vector<8x8xf32> to vector<1x8x8xf32>
    %67 = vector.broadcast %66 : vector<1x8x8xf32> to vector<4x8x8xf32>
    %68 = arith.addf %65, %67 : vector<4x8x8xf32>
    %cst_22 = arith.constant dense<0xFF800000> : vector<4x8xf32>
    %69 = vector.multi_reduction <maximumf>, %68, %cst_22 [2] : vector<4x8x8xf32> to vector<4x8xf32>
    %70 = vector.shape_cast %69 : vector<4x8xf32> to vector<4x8x1xf32>
    %71 = vector.broadcast %70 : vector<4x8x1xf32> to vector<4x8x8xf32>
    %72 = arith.subf %68, %71 : vector<4x8x8xf32>
    %73 = math.exp %72 : vector<4x8x8xf32>
    %cst_23 = arith.constant dense<0.000000e+00> : vector<4x8xf32>
    %74 = vector.multi_reduction <add>, %73, %cst_23 [2] : vector<4x8x8xf32> to vector<4x8xf32>
    %75 = vector.shape_cast %74 : vector<4x8xf32> to vector<4x8x1xf32>
    %76 = vector.broadcast %75 : vector<4x8x1xf32> to vector<4x8x8xf32>
    %77 = arith.divf %73, %76 : vector<4x8x8xf32>
    "tpu.trace_start"() <{level = 10 : i32, message = "hqk,hkd->hqd"}> : () -> ()
    %cst_24 = arith.constant dense<0.000000e+00> : vector<4x8x8xf32>
    %78 = tpu.matmul %77, %62, %cst_24 {dimension_numbers = #tpu.dot_dimension_numbers<[2], [1], [1], [2], [0, 0, 0, 1, 1, 2], [0], [0]>} : vector<4x8x8xf32>, vector<4x8x8xf32>, vector<4x8x8xf32> -> vector<4x8x8xf32>
    "tpu.trace_stop"() : () -> ()
    %79 = vector.extract_strided_slice %78 {offsets = [0, 0, 0], sizes = [1, 8, 8], strides = [1, 1, 1]} : vector<4x8x8xf32> to vector<1x8x8xf32>
    %80 = vector.shape_cast %79 : vector<1x8x8xf32> to vector<8x8xf32>
    %81 = vector.extract_strided_slice %78 {offsets = [1, 0, 0], sizes = [1, 8, 8], strides = [1, 1, 1]} : vector<4x8x8xf32> to vector<1x8x8xf32>
    %82 = vector.shape_cast %81 : vector<1x8x8xf32> to vector<8x8xf32>
    %83 = vector.extract_strided_slice %78 {offsets = [2, 0, 0], sizes = [1, 8, 8], strides = [1, 1, 1]} : vector<4x8x8xf32> to vector<1x8x8xf32>
    %84 = vector.shape_cast %83 : vector<1x8x8xf32> to vector<8x8xf32>
    %85 = vector.extract_strided_slice %78 {offsets = [3, 0, 0], sizes = [1, 8, 8], strides = [1, 1, 1]} : vector<4x8x8xf32> to vector<1x8x8xf32>
    %86 = vector.shape_cast %85 : vector<1x8x8xf32> to vector<8x8xf32>
    %87 = tpu.concatenate %80, %82, %84, %86 in 1 : vector<8x8xf32>, vector<8x8xf32>, vector<8x8xf32>, vector<8x8xf32> -> vector<8x32xf32>
    %88 = arith.truncf %87 : vector<8x32xf32> to vector<8x32xbf16>
    %c0_25 = arith.constant 0 : index
    %c0_26 = arith.constant 0 : index
    %c0_27 = arith.constant 0 : index
    %89 = vector.load %arg6[%c0_25, %c0_26, %c0_27] : memref<2x32x32xbf16, #tpu.memory_space<vmem>>, vector<1x32x32xbf16>
    %90 = vector.shape_cast %89 : vector<1x32x32xbf16> to vector<32x32xbf16>
    %cst_28 = arith.constant dense<0.000000e+00> : vector<8x32xf32>
    %91 = tpu.matmul %88, %90, %cst_28 {dimension_numbers = #tpu.dot_dimension_numbers<[1], [0], [0], [1], [0, 0, 1, 1], [], []>} : vector<8x32xbf16>, vector<32x32xbf16>, vector<8x32xf32> -> vector<8x32xf32>
    %c0_29 = arith.constant 0 : index
    %c0_30 = arith.constant 0 : index
    %c0_31 = arith.constant 0 : index
    %92 = vector.load %arg7[%c0_29, %c0_30, %c0_31] : memref<2x1x32xf32, #tpu.memory_space<vmem>>, vector<1x1x32xf32>
    %93 = vector.shape_cast %92 : vector<1x1x32xf32> to vector<1x32xf32>
    %94 = vector.broadcast %93 : vector<1x32xf32> to vector<8x32xf32>
    %95 = arith.addf %91, %94 : vector<8x32xf32>
    %96 = arith.addf %0, %95 : vector<8x32xf32>
    %c0_32 = arith.constant 0 : index
    %c0_33 = arith.constant 0 : index
    %c0_34 = arith.constant 0 : index
    %97 = vector.load %arg8[%c0_32, %c0_33, %c0_34] : memref<2x1x32xf32, #tpu.memory_space<vmem>>, vector<1x1x32xf32>
    %98 = vector.shape_cast %97 : vector<1x1x32xf32> to vector<1x32xf32>
    %c0_35 = arith.constant 0 : index
    %c0_36 = arith.constant 0 : index
    %c0_37 = arith.constant 0 : index
    %99 = vector.load %arg9[%c0_35, %c0_36, %c0_37] : memref<2x1x32xf32, #tpu.memory_space<vmem>>, vector<1x1x32xf32>
    %100 = vector.shape_cast %99 : vector<1x1x32xf32> to vector<1x32xf32>
    %cst_38 = arith.constant dense<0.000000e+00> : vector<8xf32>
    %101 = vector.multi_reduction <add>, %96, %cst_38 [1] : vector<8x32xf32> to vector<8xf32>
    %102 = vector.shape_cast %101 : vector<8xf32> to vector<8x1xf32>
    %cst_39 = arith.constant 3.200000e+01 : f32
    %103 = vector.broadcast %cst_39 : f32 to vector<8x1xf32>
    %104 = arith.divf %102, %103 : vector<8x1xf32>
    %105 = vector.broadcast %104 : vector<8x1xf32> to vector<8x32xf32>
    %106 = arith.subf %96, %105 : vector<8x32xf32>
    %107 = arith.mulf %106, %106 : vector<8x32xf32>
    %cst_40 = arith.constant dense<0.000000e+00> : vector<8xf32>
    %108 = vector.multi_reduction <add>, %107, %cst_40 [1] : vector<8x32xf32> to vector<8xf32>
    %109 = vector.shape_cast %108 : vector<8xf32> to vector<8x1xf32>
    %cst_41 = arith.constant 3.200000e+01 : f32
    %110 = vector.broadcast %cst_41 : f32 to vector<8x1xf32>
    %111 = arith.divf %109, %110 : vector<8x1xf32>
    %112 = vector.broadcast %104 : vector<8x1xf32> to vector<8x32xf32>
    %113 = arith.subf %96, %112 : vector<8x32xf32>
    %cst_42 = arith.constant 9.99999974E-6 : f32
    %114 = vector.broadcast %cst_42 : f32 to vector<8x1xf32>
    %115 = arith.addf %111, %114 : vector<8x1xf32>
    %116 = math.rsqrt %115 : vector<8x1xf32>
    %117 = vector.broadcast %116 : vector<8x1xf32> to vector<8x32xf32>
    %118 = arith.mulf %113, %117 : vector<8x32xf32>
    %119 = vector.broadcast %98 : vector<1x32xf32> to vector<8x32xf32>
    %120 = arith.mulf %118, %119 : vector<8x32xf32>
    %121 = vector.broadcast %100 : vector<1x32xf32> to vector<8x32xf32>
    %122 = arith.addf %120, %121 : vector<8x32xf32>
    %123 = arith.truncf %122 : vector<8x32xf32> to vector<8x32xbf16>
    %c0_43 = arith.constant 0 : index
    %c0_44 = arith.constant 0 : index
    %c0_45 = arith.constant 0 : index
    %124 = vector.load %arg10[%c0_43, %c0_44, %c0_45] : memref<2x32x128xbf16, #tpu.memory_space<vmem>>, vector<1x32x128xbf16>
    %125 = vector.shape_cast %124 : vector<1x32x128xbf16> to vector<32x128xbf16>
    %cst_46 = arith.constant dense<0.000000e+00> : vector<8x128xf32>
    %126 = tpu.matmul %123, %125, %cst_46 {dimension_numbers = #tpu.dot_dimension_numbers<[1], [0], [0], [1], [0, 0, 1, 1], [], []>} : vector<8x32xbf16>, vector<32x128xbf16>, vector<8x128xf32> -> vector<8x128xf32>
    %c0_47 = arith.constant 0 : index
    %c0_48 = arith.constant 0 : index
    %c0_49 = arith.constant 0 : index
    %127 = vector.load %arg11[%c0_47, %c0_48, %c0_49] : memref<2x1x128xf32, #tpu.memory_space<vmem>>, vector<1x1x128xf32>
    %128 = vector.shape_cast %127 : vector<1x1x128xf32> to vector<1x128xf32>
    %129 = vector.broadcast %128 : vector<1x128xf32> to vector<8x128xf32>
    %130 = arith.addf %126, %129 : vector<8x128xf32>
    %cst_50 = arith.constant 5.000000e-01 : f32
    %131 = vector.broadcast %cst_50 : f32 to vector<8x128xf32>
    %132 = arith.mulf %131, %130 : vector<8x128xf32>
    %cst_51 = arith.constant 4.471500e-02 : f32
    %133 = vector.broadcast %cst_51 : f32 to vector<8x128xf32>
    %134 = arith.mulf %133, %130 : vector<8x128xf32>
    %135 = arith.mulf %134, %130 : vector<8x128xf32>
    %136 = arith.mulf %135, %130 : vector<8x128xf32>
    %137 = arith.addf %130, %136 : vector<8x128xf32>
    %cst_52 = arith.constant 0.797884583 : f32
    %138 = vector.broadcast %cst_52 : f32 to vector<8x128xf32>
    %139 = arith.mulf %138, %137 : vector<8x128xf32>
    %140 = math.tanh %139 : vector<8x128xf32>
    %cst_53 = arith.constant 1.000000e+00 : f32
    %141 = vector.broadcast %cst_53 : f32 to vector<8x128xf32>
    %142 = arith.addf %141, %140 : vector<8x128xf32>
    %143 = arith.mulf %132, %142 : vector<8x128xf32>
    %144 = arith.truncf %143 : vector<8x128xf32> to vector<8x128xbf16>
    %c0_54 = arith.constant 0 : index
    %c0_55 = arith.constant 0 : index
    %c0_56 = arith.constant 0 : index
    %145 = vector.load %arg12[%c0_54, %c0_55, %c0_56] : memref<2x128x32xbf16, #tpu.memory_space<vmem>>, vector<1x128x32xbf16>
    %146 = vector.shape_cast %145 : vector<1x128x32xbf16> to vector<128x32xbf16>
    %cst_57 = arith.constant dense<0.000000e+00> : vector<8x32xf32>
    %147 = tpu.matmul %144, %146, %cst_57 {dimension_numbers = #tpu.dot_dimension_numbers<[1], [0], [0], [1], [0, 0, 1, 1], [], []>} : vector<8x128xbf16>, vector<128x32xbf16>, vector<8x32xf32> -> vector<8x32xf32>
    %c0_58 = arith.constant 0 : index
    %c0_59 = arith.constant 0 : index
    %c0_60 = arith.constant 0 : index
    %148 = vector.load %arg13[%c0_58, %c0_59, %c0_60] : memref<2x1x32xf32, #tpu.memory_space<vmem>>, vector<1x1x32xf32>
    %149 = vector.shape_cast %148 : vector<1x1x32xf32> to vector<1x32xf32>
    %150 = vector.broadcast %149 : vector<1x32xf32> to vector<8x32xf32>
    %151 = arith.addf %147, %150 : vector<8x32xf32>
    %152 = arith.addf %96, %151 : vector<8x32xf32>
    %153 = tpu.concatenate %95, %151, %152 in 1 : vector<8x32xf32>, vector<8x32xf32>, vector<8x32xf32> -> vector<8x96xf32>
    %c0_61 = arith.constant 0 : index
    %c0_62 = arith.constant 0 : index
    %c0_63 = arith.constant 0 : index
    %154 = vector.load %arg14[%c0_61, %c0_62, %c0_63] : memref<2x8x96xf32, #tpu.memory_space<vmem>>, vector<1x8x96xf32>
    %155 = vector.shape_cast %154 : vector<1x8x96xf32> to vector<8x96xf32>
    %156 = vector.shape_cast %153 : vector<8x96xf32> to vector<1x8x96xf32>
    tpu.vector_store %arg14[%c0_61, %c0_62, %c0_63], %156 {strides = array<i32>} : memref<2x8x96xf32, #tpu.memory_space<vmem>>, vector<1x8x96xf32>,
    %c1 = arith.constant 1 : index
    %c0_64 = arith.constant 0 : index
    %c0_65 = arith.constant 0 : index
    %157 = vector.load %arg2[%c1, %c0_64, %c0_65] : memref<2x1x32xf32, #tpu.memory_space<vmem>>, vector<1x1x32xf32>
    %158 = vector.shape_cast %157 : vector<1x1x32xf32> to vector<1x32xf32>
    %c1_66 = arith.constant 1 : index
    %c0_67 = arith.constant 0 : index
    %c0_68 = arith.constant 0 : index
    %159 = vector.load %arg3[%c1_66, %c0_67, %c0_68] : memref<2x1x32xf32, #tpu.memory_space<vmem>>, vector<1x1x32xf32>
    %160 = vector.shape_cast %159 : vector<1x1x32xf32> to vector<1x32xf32>
    %cst_69 = arith.constant dense<0.000000e+00> : vector<8xf32>
    %161 = vector.multi_reduction <add>, %152, %cst_69 [1] : vector<8x32xf32> to vector<8xf32>
    %162 = vector.shape_cast %161 : vector<8xf32> to vector<8x1xf32>
    %cst_70 = arith.constant 3.200000e+01 : f32
    %163 = vector.broadcast %cst_70 : f32 to vector<8x1xf32>
    %164 = arith.divf %162, %163 : vector<8x1xf32>
    %165 = vector.broadcast %164 : vector<8x1xf32> to vector<8x32xf32>
    %166 = arith.subf %152, %165 : vector<8x32xf32>
    %167 = arith.mulf %166, %166 : vector<8x32xf32>
    %cst_71 = arith.constant dense<0.000000e+00> : vector<8xf32>
    %168 = vector.multi_reduction <add>, %167, %cst_71 [1] : vector<8x32xf32> to vector<8xf32>
    %169 = vector.shape_cast %168 : vector<8xf32> to vector<8x1xf32>
    %cst_72 = arith.constant 3.200000e+01 : f32
    %170 = vector.broadcast %cst_72 : f32 to vector<8x1xf32>
    %171 = arith.divf %169, %170 : vector<8x1xf32>
    %172 = vector.broadcast %164 : vector<8x1xf32> to vector<8x32xf32>
    %173 = arith.subf %152, %172 : vector<8x32xf32>
    %cst_73 = arith.constant 9.99999974E-6 : f32
    %174 = vector.broadcast %cst_73 : f32 to vector<8x1xf32>
    %175 = arith.addf %171, %174 : vector<8x1xf32>
    %176 = math.rsqrt %175 : vector<8x1xf32>
    %177 = vector.broadcast %176 : vector<8x1xf32> to vector<8x32xf32>
    %178 = arith.mulf %173, %177 : vector<8x32xf32>
    %179 = vector.broadcast %158 : vector<1x32xf32> to vector<8x32xf32>
    %180 = arith.mulf %178, %179 : vector<8x32xf32>
    %181 = vector.broadcast %160 : vector<1x32xf32> to vector<8x32xf32>
    %182 = arith.addf %180, %181 : vector<8x32xf32>
    %183 = arith.truncf %182 : vector<8x32xf32> to vector<8x32xbf16>
    %c1_74 = arith.constant 1 : index
    %c0_75 = arith.constant 0 : index
    %c0_76 = arith.constant 0 : index
    %184 = vector.load %arg4[%c1_74, %c0_75, %c0_76] : memref<2x32x96xbf16, #tpu.memory_space<vmem>>, vector<1x32x96xbf16>
    %185 = vector.shape_cast %184 : vector<1x32x96xbf16> to vector<32x96xbf16>
    %cst_77 = arith.constant dense<0.000000e+00> : vector<8x96xf32>
    %186 = tpu.matmul %183, %185, %cst_77 {dimension_numbers = #tpu.dot_dimension_numbers<[1], [0], [0], [1], [0, 0, 1, 1], [], []>} : vector<8x32xbf16>, vector<32x96xbf16>, vector<8x96xf32> -> vector<8x96xf32>
    %c1_78 = arith.constant 1 : index
    %c0_79 = arith.constant 0 : index
    %c0_80 = arith.constant 0 : index
    %187 = vector.load %arg5[%c1_78, %c0_79, %c0_80] : memref<2x1x96xf32, #tpu.memory_space<vmem>>, vector<1x1x96xf32>
    %188 = vector.shape_cast %187 : vector<1x1x96xf32> to vector<1x96xf32>
    %189 = vector.broadcast %188 : vector<1x96xf32> to vector<8x96xf32>
    %190 = arith.addf %186, %189 : vector<8x96xf32>
    %191 = vector.extract_strided_slice %190 {offsets = [0, 0], sizes = [8, 8], strides = [1, 1]} : vector<8x96xf32> to vector<8x8xf32>
    %192 = vector.extract_strided_slice %190 {offsets = [0, 8], sizes = [8, 8], strides = [1, 1]} : vector<8x96xf32> to vector<8x8xf32>
    %193 = vector.extract_strided_slice %190 {offsets = [0, 16], sizes = [8, 8], strides = [1, 1]} : vector<8x96xf32> to vector<8x8xf32>
    %194 = vector.extract_strided_slice %190 {offsets = [0, 24], sizes = [8, 8], strides = [1, 1]} : vector<8x96xf32> to vector<8x8xf32>
    %195 = vector.shape_cast %191 : vector<8x8xf32> to vector<1x8x8xf32>
    %196 = vector.shape_cast %192 : vector<8x8xf32> to vector<1x8x8xf32>
    %197 = vector.shape_cast %193 : vector<8x8xf32> to vector<1x8x8xf32>
    %198 = vector.shape_cast %194 : vector<8x8xf32> to vector<1x8x8xf32>
    %199 = tpu.concatenate %195, %196, %197, %198 in 0 : vector<1x8x8xf32>, vector<1x8x8xf32>, vector<1x8x8xf32>, vector<1x8x8xf32> -> vector<4x8x8xf32>
    %200 = vector.extract_strided_slice %190 {offsets = [0, 32], sizes = [8, 8], strides = [1, 1]} : vector<8x96xf32> to vector<8x8xf32>
    %201 = vector.extract_strided_slice %190 {offsets = [0, 40], sizes = [8, 8], strides = [1, 1]} : vector<8x96xf32> to vector<8x8xf32>
    %202 = vector.extract_strided_slice %190 {offsets = [0, 48], sizes = [8, 8], strides = [1, 1]} : vector<8x96xf32> to vector<8x8xf32>
    %203 = vector.extract_strided_slice %190 {offsets = [0, 56], sizes = [8, 8], strides = [1, 1]} : vector<8x96xf32> to vector<8x8xf32>
    %204 = vector.shape_cast %200 : vector<8x8xf32> to vector<1x8x8xf32>
    %205 = vector.shape_cast %201 : vector<8x8xf32> to vector<1x8x8xf32>
    %206 = vector.shape_cast %202 : vector<8x8xf32> to vector<1x8x8xf32>
    %207 = vector.shape_cast %203 : vector<8x8xf32> to vector<1x8x8xf32>
    %208 = tpu.concatenate %204, %205, %206, %207 in 0 : vector<1x8x8xf32>, vector<1x8x8xf32>, vector<1x8x8xf32>, vector<1x8x8xf32> -> vector<4x8x8xf32>
    %209 = vector.extract_strided_slice %190 {offsets = [0, 64], sizes = [8, 8], strides = [1, 1]} : vector<8x96xf32> to vector<8x8xf32>
    %210 = vector.extract_strided_slice %190 {offsets = [0, 72], sizes = [8, 8], strides = [1, 1]} : vector<8x96xf32> to vector<8x8xf32>
    %211 = vector.extract_strided_slice %190 {offsets = [0, 80], sizes = [8, 8], strides = [1, 1]} : vector<8x96xf32> to vector<8x8xf32>
    %212 = vector.extract_strided_slice %190 {offsets = [0, 88], sizes = [8, 8], strides = [1, 1]} : vector<8x96xf32> to vector<8x8xf32>
    %213 = vector.shape_cast %209 : vector<8x8xf32> to vector<1x8x8xf32>
    %214 = vector.shape_cast %210 : vector<8x8xf32> to vector<1x8x8xf32>
    %215 = vector.shape_cast %211 : vector<8x8xf32> to vector<1x8x8xf32>
    %216 = vector.shape_cast %212 : vector<8x8xf32> to vector<1x8x8xf32>
    %217 = tpu.concatenate %213, %214, %215, %216 in 0 : vector<1x8x8xf32>, vector<1x8x8xf32>, vector<1x8x8xf32>, vector<1x8x8xf32> -> vector<4x8x8xf32>
    "tpu.trace_start"() <{level = 10 : i32, message = "hqd,hkd->hqk"}> : () -> ()
    %cst_81 = arith.constant dense<0.000000e+00> : vector<4x8x8xf32>
    %218 = tpu.matmul %199, %208, %cst_81 {dimension_numbers = #tpu.dot_dimension_numbers<[2], [2], [1], [1], [0, 0, 0, 1, 1, 1], [0], [0]>} : vector<4x8x8xf32>, vector<4x8x8xf32>, vector<4x8x8xf32> -> vector<4x8x8xf32>
    "tpu.trace_stop"() : () -> ()
    %cst_82 = arith.constant 0.353553385 : f32
    %219 = vector.broadcast %cst_82 : f32 to vector<4x8x8xf32>
    %220 = arith.mulf %218, %219 : vector<4x8x8xf32>
    %221 = vector.shape_cast %1 : vector<8x8xf32> to vector<1x8x8xf32>
    %222 = vector.broadcast %221 : vector<1x8x8xf32> to vector<4x8x8xf32>
    %223 = arith.addf %220, %222 : vector<4x8x8xf32>
    %cst_83 = arith.constant dense<0xFF800000> : vector<4x8xf32>
    %224 = vector.multi_reduction <maximumf>, %223, %cst_83 [2] : vector<4x8x8xf32> to vector<4x8xf32>
    %225 = vector.shape_cast %224 : vector<4x8xf32> to vector<4x8x1xf32>
    %226 = vector.broadcast %225 : vector<4x8x1xf32> to vector<4x8x8xf32>
    %227 = arith.subf %223, %226 : vector<4x8x8xf32>
    %228 = math.exp %227 : vector<4x8x8xf32>
    %cst_84 = arith.constant dense<0.000000e+00> : vector<4x8xf32>
    %229 = vector.multi_reduction <add>, %228, %cst_84 [2] : vector<4x8x8xf32> to vector<4x8xf32>
    %230 = vector.shape_cast %229 : vector<4x8xf32> to vector<4x8x1xf32>
    %231 = vector.broadcast %230 : vector<4x8x1xf32> to vector<4x8x8xf32>
    %232 = arith.divf %228, %231 : vector<4x8x8xf32>
    "tpu.trace_start"() <{level = 10 : i32, message = "hqk,hkd->hqd"}> : () -> ()
    %cst_85 = arith.constant dense<0.000000e+00> : vector<4x8x8xf32>
    %233 = tpu.matmul %232, %217, %cst_85 {dimension_numbers = #tpu.dot_dimension_numbers<[2], [1], [1], [2], [0, 0, 0, 1, 1, 2], [0], [0]>} : vector<4x8x8xf32>, vector<4x8x8xf32>, vector<4x8x8xf32> -> vector<4x8x8xf32>
    "tpu.trace_stop"() : () -> ()
    %234 = vector.extract_strided_slice %233 {offsets = [0, 0, 0], sizes = [1, 8, 8], strides = [1, 1, 1]} : vector<4x8x8xf32> to vector<1x8x8xf32>
    %235 = vector.shape_cast %234 : vector<1x8x8xf32> to vector<8x8xf32>
    %236 = vector.extract_strided_slice %233 {offsets = [1, 0, 0], sizes = [1, 8, 8], strides = [1, 1, 1]} : vector<4x8x8xf32> to vector<1x8x8xf32>
    %237 = vector.shape_cast %236 : vector<1x8x8xf32> to vector<8x8xf32>
    %238 = vector.extract_strided_slice %233 {offsets = [2, 0, 0], sizes = [1, 8, 8], strides = [1, 1, 1]} : vector<4x8x8xf32> to vector<1x8x8xf32>
    %239 = vector.shape_cast %238 : vector<1x8x8xf32> to vector<8x8xf32>
    %240 = vector.extract_strided_slice %233 {offsets = [3, 0, 0], sizes = [1, 8, 8], strides = [1, 1, 1]} : vector<4x8x8xf32> to vector<1x8x8xf32>
    %241 = vector.shape_cast %240 : vector<1x8x8xf32> to vector<8x8xf32>
    %242 = tpu.concatenate %235, %237, %239, %241 in 1 : vector<8x8xf32>, vector<8x8xf32>, vector<8x8xf32>, vector<8x8xf32> -> vector<8x32xf32>
    %243 = arith.truncf %242 : vector<8x32xf32> to vector<8x32xbf16>
    %c1_86 = arith.constant 1 : index
    %c0_87 = arith.constant 0 : index
    %c0_88 = arith.constant 0 : index
    %244 = vector.load %arg6[%c1_86, %c0_87, %c0_88] : memref<2x32x32xbf16, #tpu.memory_space<vmem>>, vector<1x32x32xbf16>
    %245 = vector.shape_cast %244 : vector<1x32x32xbf16> to vector<32x32xbf16>
    %cst_89 = arith.constant dense<0.000000e+00> : vector<8x32xf32>
    %246 = tpu.matmul %243, %245, %cst_89 {dimension_numbers = #tpu.dot_dimension_numbers<[1], [0], [0], [1], [0, 0, 1, 1], [], []>} : vector<8x32xbf16>, vector<32x32xbf16>, vector<8x32xf32> -> vector<8x32xf32>
    %c1_90 = arith.constant 1 : index
    %c0_91 = arith.constant 0 : index
    %c0_92 = arith.constant 0 : index
    %247 = vector.load %arg7[%c1_90, %c0_91, %c0_92] : memref<2x1x32xf32, #tpu.memory_space<vmem>>, vector<1x1x32xf32>
    %248 = vector.shape_cast %247 : vector<1x1x32xf32> to vector<1x32xf32>
    %249 = vector.broadcast %248 : vector<1x32xf32> to vector<8x32xf32>
    %250 = arith.addf %246, %249 : vector<8x32xf32>
    %251 = arith.addf %152, %250 : vector<8x32xf32>
    %c1_93 = arith.constant 1 : index
    %c0_94 = arith.constant 0 : index
    %c0_95 = arith.constant 0 : index
    %252 = vector.load %arg8[%c1_93, %c0_94, %c0_95] : memref<2x1x32xf32, #tpu.memory_space<vmem>>, vector<1x1x32xf32>
    %253 = vector.shape_cast %252 : vector<1x1x32xf32> to vector<1x32xf32>
    %c1_96 = arith.constant 1 : index
    %c0_97 = arith.constant 0 : index
    %c0_98 = arith.constant 0 : index
    %254 = vector.load %arg9[%c1_96, %c0_97, %c0_98] : memref<2x1x32xf32, #tpu.memory_space<vmem>>, vector<1x1x32xf32>
    %255 = vector.shape_cast %254 : vector<1x1x32xf32> to vector<1x32xf32>
    %cst_99 = arith.constant dense<0.000000e+00> : vector<8xf32>
    %256 = vector.multi_reduction <add>, %251, %cst_99 [1] : vector<8x32xf32> to vector<8xf32>
    %257 = vector.shape_cast %256 : vector<8xf32> to vector<8x1xf32>
    %cst_100 = arith.constant 3.200000e+01 : f32
    %258 = vector.broadcast %cst_100 : f32 to vector<8x1xf32>
    %259 = arith.divf %257, %258 : vector<8x1xf32>
    %260 = vector.broadcast %259 : vector<8x1xf32> to vector<8x32xf32>
    %261 = arith.subf %251, %260 : vector<8x32xf32>
    %262 = arith.mulf %261, %261 : vector<8x32xf32>
    %cst_101 = arith.constant dense<0.000000e+00> : vector<8xf32>
    %263 = vector.multi_reduction <add>, %262, %cst_101 [1] : vector<8x32xf32> to vector<8xf32>
    %264 = vector.shape_cast %263 : vector<8xf32> to vector<8x1xf32>
    %cst_102 = arith.constant 3.200000e+01 : f32
    %265 = vector.broadcast %cst_102 : f32 to vector<8x1xf32>
    %266 = arith.divf %264, %265 : vector<8x1xf32>
    %267 = vector.broadcast %259 : vector<8x1xf32> to vector<8x32xf32>
    %268 = arith.subf %251, %267 : vector<8x32xf32>
    %cst_103 = arith.constant 9.99999974E-6 : f32
    %269 = vector.broadcast %cst_103 : f32 to vector<8x1xf32>
    %270 = arith.addf %266, %269 : vector<8x1xf32>
    %271 = math.rsqrt %270 : vector<8x1xf32>
    %272 = vector.broadcast %271 : vector<8x1xf32> to vector<8x32xf32>
    %273 = arith.mulf %268, %272 : vector<8x32xf32>
    %274 = vector.broadcast %253 : vector<1x32xf32> to vector<8x32xf32>
    %275 = arith.mulf %273, %274 : vector<8x32xf32>
    %276 = vector.broadcast %255 : vector<1x32xf32> to vector<8x32xf32>
    %277 = arith.addf %275, %276 : vector<8x32xf32>
    %278 = arith.truncf %277 : vector<8x32xf32> to vector<8x32xbf16>
    %c1_104 = arith.constant 1 : index
    %c0_105 = arith.constant 0 : index
    %c0_106 = arith.constant 0 : index
    %279 = vector.load %arg10[%c1_104, %c0_105, %c0_106] : memref<2x32x128xbf16, #tpu.memory_space<vmem>>, vector<1x32x128xbf16>
    %280 = vector.shape_cast %279 : vector<1x32x128xbf16> to vector<32x128xbf16>
    %cst_107 = arith.constant dense<0.000000e+00> : vector<8x128xf32>
    %281 = tpu.matmul %278, %280, %cst_107 {dimension_numbers = #tpu.dot_dimension_numbers<[1], [0], [0], [1], [0, 0, 1, 1], [], []>} : vector<8x32xbf16>, vector<32x128xbf16>, vector<8x128xf32> -> vector<8x128xf32>
    %c1_108 = arith.constant 1 : index
    %c0_109 = arith.constant 0 : index
    %c0_110 = arith.constant 0 : index
    %282 = vector.load %arg11[%c1_108, %c0_109, %c0_110] : memref<2x1x128xf32, #tpu.memory_space<vmem>>, vector<1x1x128xf32>
    %283 = vector.shape_cast %282 : vector<1x1x128xf32> to vector<1x128xf32>
    %284 = vector.broadcast %283 : vector<1x128xf32> to vector<8x128xf32>
    %285 = arith.addf %281, %284 : vector<8x128xf32>
    %cst_111 = arith.constant 5.000000e-01 : f32
    %286 = vector.broadcast %cst_111 : f32 to vector<8x128xf32>
    %287 = arith.mulf %286, %285 : vector<8x128xf32>
    %cst_112 = arith.constant 4.471500e-02 : f32
    %288 = vector.broadcast %cst_112 : f32 to vector<8x128xf32>
    %289 = arith.mulf %288, %285 : vector<8x128xf32>
    %290 = arith.mulf %289, %285 : vector<8x128xf32>
    %291 = arith.mulf %290, %285 : vector<8x128xf32>
    %292 = arith.addf %285, %291 : vector<8x128xf32>
    %cst_113 = arith.constant 0.797884583 : f32
    %293 = vector.broadcast %cst_113 : f32 to vector<8x128xf32>
    %294 = arith.mulf %293, %292 : vector<8x128xf32>
    %295 = math.tanh %294 : vector<8x128xf32>
    %cst_114 = arith.constant 1.000000e+00 : f32
    %296 = vector.broadcast %cst_114 : f32 to vector<8x128xf32>
    %297 = arith.addf %296, %295 : vector<8x128xf32>
    %298 = arith.mulf %287, %297 : vector<8x128xf32>
    %299 = arith.truncf %298 : vector<8x128xf32> to vector<8x128xbf16>
    %c1_115 = arith.constant 1 : index
    %c0_116 = arith.constant 0 : index
    %c0_117 = arith.constant 0 : index
    %300 = vector.load %arg12[%c1_115, %c0_116, %c0_117] : memref<2x128x32xbf16, #tpu.memory_space<vmem>>, vector<1x128x32xbf16>
    %301 = vector.shape_cast %300 : vector<1x128x32xbf16> to vector<128x32xbf16>
    %cst_118 = arith.constant dense<0.000000e+00> : vector<8x32xf32>
    %302 = tpu.matmul %299, %301, %cst_118 {dimension_numbers = #tpu.dot_dimension_numbers<[1], [0], [0], [1], [0, 0, 1, 1], [], []>} : vector<8x128xbf16>, vector<128x32xbf16>, vector<8x32xf32> -> vector<8x32xf32>
    %c1_119 = arith.constant 1 : index
    %c0_120 = arith.constant 0 : index
    %c0_121 = arith.constant 0 : index
    %303 = vector.load %arg13[%c1_119, %c0_120, %c0_121] : memref<2x1x32xf32, #tpu.memory_space<vmem>>, vector<1x1x32xf32>
    %304 = vector.shape_cast %303 : vector<1x1x32xf32> to vector<1x32xf32>
    %305 = vector.broadcast %304 : vector<1x32xf32> to vector<8x32xf32>
    %306 = arith.addf %302, %305 : vector<8x32xf32>
    %307 = arith.addf %251, %306 : vector<8x32xf32>
    %308 = tpu.concatenate %250, %306, %307 in 1 : vector<8x32xf32>, vector<8x32xf32>, vector<8x32xf32> -> vector<8x96xf32>
    %c1_122 = arith.constant 1 : index
    %c0_123 = arith.constant 0 : index
    %c0_124 = arith.constant 0 : index
    %309 = vector.load %arg14[%c1_122, %c0_123, %c0_124] : memref<2x8x96xf32, #tpu.memory_space<vmem>>, vector<1x8x96xf32>
    %310 = vector.shape_cast %309 : vector<1x8x96xf32> to vector<8x96xf32>
    %311 = vector.shape_cast %308 : vector<8x96xf32> to vector<1x8x96xf32>
    tpu.vector_store %arg14[%c1_122, %c0_123, %c0_124], %311 {strides = array<i32>} : memref<2x8x96xf32, #tpu.memory_space<vmem>>, vector<1x8x96xf32>,
    return
  }
}

</mosaic_0001>

<bundles_post_ra>
// kernel: gpt2_forward.1
= control target key start
LH: loop header
LB: loop body
LE: loop exit
PB: predicated region body
PF: predicated region fallthrough
CT: control target
= control target key end

     0   :  { %vm53_vm0 = vcmask 261120   ;;  %s3193_s0 = inlined_call_operand.vmem [shape: f32[8,32], index: 0, kind: input, shape index: {}]   ;;  %s3194_s1 = inlined_call_operand.vmem [shape: f32[8,8], index: 1, kind: input, shape index: {}]   ;;  %s3195_s2 = inlined_call_operand.vmem [shape: f32[2,1,32], index: 2, kind: input, shape index: {}]   ;;  %s3196_s3 = inlined_call_operand.vmem [shape: f32[2,1,32], index: 3, kind: input, shape index: {}]   ;;  %s3197_s4 = inlined_call_operand.vmem [shape: bf16[2,32,96], index: 4, kind: input, shape index: {}]   ;;  %s3198_s5 = inlined_call_operand.vmem [shape: f32[2,1,96], index: 5, kind: input, shape index: {}]   ;;  %s3199_s6 = inlined_call_operand.vmem [shape: bf16[2,32,32], index: 6, kind: input, shape index: {}]   ;;  %s3200_s7 = inlined_call_operand.vmem [shape: f32[2,1,32], index: 7, kind: input, shape index: {}]   ;;  %s3201_s8 = inlined_call_operand.vmem [shape: f32[2,1,32], index: 8, kind: input, shape index: {}]   ;;  %s3202_s9 = inlined_call_operand.vmem [shape: f32[2,1,32], index: 9, kind: input, shape index: {}]   ;;  %s3203_s10 = inlined_call_operand.vmem [shape: bf16[2,32,128], index: 10, kind: input, shape index: {}]   ;;  %s3204_s11 = inlined_call_operand.vmem [shape: f32[2,1,128], index: 11, kind: input, shape index: {}]   ;;  %s3205_s12 = inlined_call_operand.vmem [shape: bf16[2,128,32], index: 12, kind: input, shape index: {}]   ;;  %s3206_s13 = inlined_call_operand.vmem [shape: f32[2,1,32], index: 13, kind: input, shape index: {}]   ;;  %s3207_s14 = inlined_call_operand.hbm [shape: f32[2,8,96], index: 14, kind: output, shape index: {}]  }
   0x1   :  { %v2783_v0 = vld [vmem:[%s3193_s0] sm:$0xff] }
   0x2   :  { %v54_v1 = vsel %vm53_vm0, %v2783_v0, 0.0 }
   0x3   :  { %55 = vadd.xlane.f32.xlu0 %v54_v1 }
   0x4   :  { %19 = vsyncpa [#allocation3], 0  ;;  %v2596_v7 = vld [vmem:[%s3197_s4] sm:$0xff]   ;;  %v2692_v8 = vmov 0.0   ;;  %vm2693_vm1 = vmmov 0   ;;  %v2597_v9 = vld [vmem:[%s3197_s4 + $0x8] sm:$0xff]  }
   0x5   :  { %2415 = vmatprep.subr.bf16.mxu0 %v2692_v8  ;;  %2419 = vmatprep.mubr.msk.bf16.mxu0 %vm2693_vm1, %v2692_v8  ;;  %v2237_v14 = vld [vmem:[%s3195_s2] ss:$0 sm:$0xff]  ;;  %s2694_s24 = smov 104   ;;  %s2695_s25 = smov 120   ;;  %vm158_vm2 = vcmask 64512   ;;  %vm830_vm3 = vcmask 130048  }
   0x6   :  { %2416 = vmatpush3.bf16.msra.mxu0 %v2596_v7  ;;  %2423 = vmatprep.subr.mxu1 %v2692_v8  ;;  %v2238_v16 = vld [vmem:[%s3196_s3] ss:$0 sm:$0xff]  ;;  %s2696_s26 = smov 112   ;;  %s2697_s27 = smov 96   ;;  %vm832_vm4 = vcmask 195584   ;;  %vm1129_vm5 = vcmask 523264  }
   0x7   :  { %2417 = vmatprep.subr.bf16.mxu0 %v2692_v8  ;;  %2425 = vmatprep.mubr.msk.f32.mxu1 %vm2693_vm1, %v2692_v8  ;;  %v2239_v20 = vld [vmem:[%s3198_s5] ss:$0 sm:$0xff]  ;;  %s2699_s17 = smov 8   ;;  %s2700_s18 = smov 16   ;;  %vm1131_vm6 = vcmask 785408  }
   0x8   :  { %v2860_v34 = vld [vmem:[%s3194_s1] sm:$0xff]  ;;  %s2698_s1 = smov 64   ;;  %s2701_s19 = smov 24  }
   0xa   :  { %2418 = vmatpush3.bf16.msra.mxu0 %v2597_v9 }
   0xb   :  { %2438 = vmatprep.subr.mxu0 %v2692_v8 }
  0x90   :  { %v56_v2 = vpop.xlane.xlu0 %55 }
  0x91   :  { %v58_v3 = vmul.f32 0.03125, %v56_v2 }
  0x93   :  { %v59_v4 = vsub.f32 %v2783_v0, %v58_v3 }
  0x95   :  { %v60_v5 = vmul.f32 %v59_v4, %v59_v4 }
  0x97   :  { %v61_v6 = vsel %vm53_vm0, %v60_v5, 0.0 }
  0x98   :  { %62 = vadd.xlane.f32.xlu0 %v61_v6 }
 0x125   :  { %v63_v10 = vpop.xlane.xlu0 %62 }
 0x126   :  { %v64_v11 = vmul.f32 0.03125, %v63_v10 }
 0x128   :  { %v65_v12 = vadd.f32 1e-05, %v64_v11 }
 0x12a   :  { %2624 = vrsqrt.f32 %v65_v12 }
 0x134   :  { %v2625_v13 = vpop.eup %2624 }
 0x135   :  { %v67_v15 = vmul.f32 %v2625_v13, %v59_v4 }
 0x137   :  { %v74_v17 = vmul.f32 %v2237_v14, %v67_v15 }
 0x139   :  { %v81_v18 = vadd.f32 %v2238_v16, %v74_v17 }
 0x13b   :  { %v82_v19 = vpack.c.bf16 %v81_v18, %v81_v18 }
 0x13d   :  { %2420 = vmatmul.mubr.msk.bf16.vlgmr.msra.gmra.mrb[0].mxu0 %vm53_vm0, %v82_v19 }
 0x13e   :  { %2440 = vmatprep.mubr.msk.f32.mxu0 %vm2693_vm1, %v2692_v8 }
 0x210   :  { %v143_v21 = vpop.f32.mrb[0].mxu0 }
 0x211   :  { %v2815_v22 = vadd.f32 %v2239_v20, %v143_v21  ;;  %v2421_v23 = vpop.f32.mrb[1].mxu0 }
 0x212   :  { %v146_v24 = vpop.f32.mrb[2].mxu0 }
 0x213   :  { %154 = vrot.lane.b32.xlu0 %v2815_v22, %s2694_s24  ;;  %150 = vrot.lane.b32.xlu1 %v2815_v22, %s2695_s25  ;;  %v2422_v25 = vpop.f32.mrb[3].mxu0 }
 0x217   :  { %152 = vrot.lane.b32.xlu1 %v2815_v22, %s2696_s26 }
 0x21b   :  { %156 = vrot.lane.b32.xlu1 %v2815_v22, %s2697_s27 }
 0x285   :  { %v2825_v26 = vpop.permute.xlu1 %150  ;;  %v2830_v28 = vpop.permute.xlu0 %154 }
 0x286   :  { %233 = vrot.lane.b32.xlu1 %v2825_v26, %s2697_s27 }
 0x289   :  { %v153_v27 = vpop.permute.xlu1 %152 }
 0x28a   :  { %309 = vrot.lane.b32.xlu1 %v153_v27, %s2697_s27 }
 0x28d   :  { %v157_v29 = vpop.permute.xlu1 %156 }
 0x28e   :  { %385 = vrot.lane.b32.xlu1 %v2830_v28, %s2697_s27  ;;  %2424 = vmatpush3.xpose.msk.msra.mxu1 %vm158_vm2, %v157_v29 }
 0x28f   :  { %2428 = vmatprep.subr.mxu1 %v2692_v8 }
 0x291   :  { %2426 = vmatmul.mubr.msk.f32.vlgmr.msra.gmra.mrb[0].mxu1 %vm158_vm2, %v2815_v22 }
 0x292   :  { %2430 = vmatprep.mubr.msk.f32.mxu1 %vm2693_vm1, %v2692_v8 }
 0x2f8   :  { %v234_v30 = vpop.permute.xlu1 %233 }
 0x2f9   :  { %2429 = vmatpush3.xpose.msk.msra.mxu1 %vm158_vm2, %v234_v30  ;;  %v2598_v30 = vld [vmem:[%s3199_s6] sm:$0xff]  }
 0x2fa   :  { %2433 = vmatprep.subr.mxu1 %v2692_v8 }
 0x2fc   :  { %2431 = vmatmul.mubr.msk.f32.vlgmr.msra.gmra.mrb[2].mxu1 %vm158_vm2, %v2825_v26  ;;  %v310_v31 = vpop.permute.xlu1 %309 }
 0x2fd   :  { %2434 = vmatpush3.xpose.msk.msra.mxu1 %vm158_vm2, %v310_v31  ;;  %2435 = vmatprep.mubr.msk.f32.mxu1 %vm2693_vm1, %v2692_v8  ;;  %v2599_v31 = vld [vmem:[%s3199_s6 + $0x8] sm:$0xff]  }
 0x2fe   :  { %2443 = vmatprep.subr.mxu1 %v2692_v8 }
 0x300   :  { %2436 = vmatmul.mubr.msk.f32.vlgmr.msra.gmra.mrb[4].mxu1 %vm158_vm2, %v153_v27  ;;  %v386_v32 = vpop.permute.xlu1 %385 }
 0x301   :  { %2439 = vmatpush3.xpose.msk.msra.mxu0 %vm158_vm2, %v386_v32  ;;  %2445 = vmatprep.mubr.msk.f32.mxu1 %vm2693_vm1, %v2692_v8 }
 0x302   :  { %2448 = vmatprep.subr.mxu0 %v2692_v8 }
 0x304   :  { %2441 = vmatmul.mubr.msk.f32.vlgmr.msra.gmra.mrb[4].mxu0 %vm158_vm2, %v2830_v28 }
 0x305   :  { %2450 = vmatprep.mubr.msk.f32.mxu0 %vm2693_vm1, %v2692_v8 }
 0x364   :  { %v229_v33 = vpop.f32.mrb[0].mxu1 }
 0x365   :  { %v461_v35 = vmul.f32 0.35355338, %v229_v33  ;;  %v2427_v36 = vpop.f32.mrb[1].mxu1 }
 0x367   :  { %v465_v37 = vadd.f32 %v461_v35, %v2860_v34 }
 0x369   :  { %v469_v38 = vsel %vm158_vm2, %v465_v37, -inf }
 0x36a   :  { %470 = vmax.xlane.f32.xlu1 %v469_v38 }
 0x3cf   :  { %v305_v39 = vpop.f32.mrb[2].mxu1 }
 0x3d0   :  { %v462_v40 = vmul.f32 0.35355338, %v305_v39  ;;  %v2432_v41 = vpop.f32.mrb[3].mxu1 }
 0x3d2   :  { %v466_v42 = vadd.f32 %v462_v40, %v2860_v34 }
 0x3d3   :  { %v381_v43 = vpop.f32.mrb[4].mxu1 }
 0x3d4   :  { %v463_v44 = vmul.f32 0.35355338, %v381_v43  ;;  %v2437_v45 = vpop.f32.mrb[5].mxu1  ;;  %v472_v46 = vsel %vm158_vm2, %v466_v42, -inf }
 0x3d5   :  { %473 = vmax.xlane.f32.xlu0 %v472_v46  ;;  %v2255_v46 = vld [vmem:[%s3200_s7] ss:$0 sm:$0xff] }
 0x3d6   :  { %v467_v47 = vadd.f32 %v463_v44, %v2860_v34 }
 0x3d7   :  { %v457_v48 = vpop.f32.mrb[4].mxu0 }
 0x3d8   :  { %v464_v49 = vmul.f32 0.35355338, %v457_v48  ;;  %v2442_v50 = vpop.f32.mrb[5].mxu0  ;;  %v475_v51 = vsel %vm158_vm2, %v467_v47, -inf }
 0x3d9   :  { %476 = vmax.xlane.f32.xlu1 %v475_v51 }
 0x3da   :  { %v468_v52 = vadd.f32 %v464_v49, %v2860_v34 }
 0x3dc   :  { %v478_v53 = vsel %vm158_vm2, %v468_v52, -inf }
 0x3dd   :  { %479 = vmax.xlane.f32.xlu0 %v478_v53 }
 0x3ea   :  { %513 = vrot.lane.b32.xlu1 %v2815_v22, %s2698_s1 }
 0x3f7   :  { %v471_v54 = vpop.xlane.xlu1 %470 }
 0x3f8   :  { %v481_v55 = vsub.f32 %v465_v37, %v471_v54 }
 0x3fa   :  { %v485_v56 = vmul.f32 1.442695, %v481_v55 }
 0x3fc   :  { %2626 = vpow2.f32 %v485_v56 }
 0x406   :  { %v2627_v57 = vpop.eup %2626 }
 0x407   :  { %v493_v58 = vsel %vm158_vm2, %v2627_v57, 0.0 }
 0x40e   :  { %494 = vadd.xlane.f32.xlu1 %v493_v58 }
 0x41f   :  { %665 = vrot.lane.b32.xlu1 %v153_v27, %s2698_s1 }
 0x462   :  { %v474_v59 = vpop.xlane.xlu0 %473 }
 0x463   :  { %v482_v60 = vsub.f32 %v466_v42, %v474_v59  ;;  %v2600_v59 = vld [vmem:[%s3203_s10] sm:$0xff]  }
 0x465   :  { %v487_v61 = vmul.f32 1.442695, %v482_v60  ;;  %v2602_v60 = vld [vmem:[%s3205_s12] sm:$0xff]  }
 0x466   :  { %v477_v62 = vpop.xlane.xlu1 %476 }
 0x467   :  { %2628 = vpow2.f32 %v487_v61  ;;  %v483_v63 = vsub.f32 %v467_v47, %v477_v62 }
 0x469   :  { %v489_v1 = vmul.f32 1.442695, %v483_v63 }
 0x46a   :  { %v514_v2 = vpop.permute.xlu1 %513  ;;  %v480_v3 = vpop.xlane.xlu0 %479 }
 0x46b   :  { %2630 = vpow2.f32 %v489_v1  ;;  %v484_v4 = vsub.f32 %v468_v52, %v480_v3  ;;  %2444 = vmatpush3.msra.mxu1 %v514_v2  ;;  %v2259_v2 = vld [vmem:[%s3201_s8] ss:$0 sm:$0xff] }
 0x46c   :  { %2453 = vmatprep.subr.mxu1 %v2692_v8 }
 0x46d   :  { %v491_v5 = vmul.f32 1.442695, %v484_v4  ;;  %v2260_v4 = vld [vmem:[%s3202_s9] ss:$0 sm:$0xff] }
 0x46f   :  { %2632 = vpow2.f32 %v491_v5 }
 0x471   :  { %v2629_v6 = vpop.eup %2628 }
 0x472   :  { %v496_v7 = vsel %vm158_vm2, %v2629_v6, 0.0 }
 0x473   :  { %497 = vadd.xlane.f32.xlu0 %v496_v7 }
 0x475   :  { %v2631_v9 = vpop.eup %2630 }
 0x476   :  { %v499_v10 = vsel %vm158_vm2, %v2631_v9, 0.0 }
 0x477   :  { %500 = vadd.xlane.f32.xlu1 %v499_v10  ;;  %v2604_v10 = vld [vmem:[%s3205_s12 + $0x10] sm:$0xff]  }
 0x479   :  { %v2633_v11 = vpop.eup %2632 }
 0x47a   :  { %v502_v12 = vsel %vm158_vm2, %v2633_v11, 0.0 }
 0x47b   :  { %503 = vadd.xlane.f32.xlu0 %v502_v12  ;;  %v2606_v12 = vld [vmem:[%s3205_s12 + $0x20] sm:$0xff]  }
 0x488   :  { %741 = vrot.lane.b32.xlu1 %v2830_v28, %s2698_s1 }
 0x491   :  { %589 = vrot.lane.b32.xlu0 %v2825_v26, %s2698_s1 }
 0x49b   :  { %v495_v13 = vpop.xlane.xlu1 %494 }
 0x49c   :  { %2634 = vrcp.f32 %v495_v13  ;;  %v2607_v13 = vld [vmem:[%s3205_s12 + $0x28] sm:$0xff]  }
 0x49f   :  { %v666_v16 = vpop.permute.xlu1 %665 }
 0x4a6   :  { %v2635_v14 = vpop.eup %2634 }
 0x4a7   :  { %v506_v15 = vmul.f32 %v2635_v14, %v2627_v57  ;;  %v2608_v14 = vld [vmem:[%s3205_s12 + $0x30] sm:$0xff]  }
 0x4a9   :  { %2446 = vmatmul.mubr.msk.f32.vlgmr.msra.gmra.mrb[6].mxu1 %vm158_vm2, %v506_v15  ;;  %v2609_v15 = vld [vmem:[%s3205_s12 + $0x38] sm:$0xff]  }
 0x4aa   :  { %2454 = vmatpush3.msra.mxu1 %v666_v16  ;;  %2455 = vmatprep.mubr.msk.f32.mxu1 %vm2693_vm1, %v2692_v8  ;;  %v2261_v16 = vld [vmem:[%s3204_s11] ss:$0 sm:$0xff] }
 0x4ab   :  { %2479 = vmatprep.subr.bf16.mxu1 %v2692_v8 }
 0x500   :  { %v498_v17 = vpop.xlane.xlu0 %497 }
 0x501   :  { %2636 = vrcp.f32 %v498_v17 }
 0x504   :  { %v501_v18 = vpop.xlane.xlu1 %500 }
 0x505   :  { %2638 = vrcp.f32 %v501_v18 }
 0x508   :  { %v504_v19 = vpop.xlane.xlu0 %503  ;;  %v742_v23 = vpop.permute.xlu1 %741 }
 0x509   :  { %2640 = vrcp.f32 %v504_v19 }
 0x50b   :  { %v2637_v20 = vpop.eup %2636 }
 0x50c   :  { %v508_v21 = vmul.f32 %v2637_v20, %v2629_v6  ;;  %v590_v22 = vpop.permute.xlu0 %589 }
 0x50d   :  { %2449 = vmatpush3.msra.mxu0 %v590_v22 }
 0x50e   :  { %2451 = vmatmul.mubr.msk.f32.vlgmr.msra.gmra.mrb[6].mxu0 %vm158_vm2, %v508_v21  ;;  %2458 = vmatprep.subr.mxu0 %v2692_v8 }
 0x50f   :  { %v2639_v24 = vpop.eup %2638  ;;  %2459 = vmatpush3.msra.mxu0 %v742_v23  ;;  %2460 = vmatprep.mubr.msk.f32.mxu0 %vm2693_vm1, %v2692_v8 }
 0x510   :  { %v510_v25 = vmul.f32 %v2639_v24, %v2631_v9  ;;  %2463 = vmatprep.subr.bf16.mxu0 %v2692_v8  ;;  %v2603_v9 = vld [vmem:[%s3205_s12 + $0x8] sm:$0xff]  }
 0x512   :  { %2456 = vmatmul.mubr.msk.f32.vlgmr.msra.gmra.mrb[8].mxu1 %vm158_vm2, %v510_v25 }
 0x513   :  { %v2641_v26 = vpop.eup %2640  ;;  %2495 = vmatprep.mubr.msk.bf16.mxu1 %vm2693_vm1, %v2692_v8  ;;  %2480 = vmatpush3.bf16.msra.mxu1 %v2602_v60 }
 0x514   :  { %v512_v27 = vmul.f32 %v2641_v26, %v2633_v11  ;;  %2481 = vmatprep.subr.bf16.mxu1 %v2692_v8  ;;  %v2605_v11 = vld [vmem:[%s3205_s12 + $0x18] sm:$0xff]  }
 0x516   :  { %2461 = vmatmul.mubr.msk.f32.vlgmr.msra.gmra.mrb[8].mxu0 %vm158_vm2, %v512_v27 }
 0x517   :  { %2467 = vmatprep.mubr.msk.bf16.mxu0 %vm2693_vm1, %v2692_v8  ;;  %2464 = vmatpush3.bf16.msra.mxu0 %v2598_v30 }
 0x518   :  { %2465 = vmatprep.subr.bf16.mxu0 %v2692_v8  ;;  %2482 = vmatpush3.bf16.msra.mxu1 %v2603_v9 }
 0x519   :  { %2483 = vmatprep.subr.bf16.mxu1 %v2692_v8 }
 0x51b   :  { %2466 = vmatpush3.bf16.msra.mxu0 %v2599_v31 }
 0x51c   :  { %2471 = vmatprep.subr.bf16.mxu0 %v2692_v8  ;;  %2484 = vmatpush3.bf16.msra.mxu1 %v2604_v10 }
 0x51d   :  { %2485 = vmatprep.subr.bf16.mxu1 %v2692_v8 }
 0x520   :  { %2486 = vmatpush3.bf16.msra.mxu1 %v2605_v11 }
 0x521   :  { %2487 = vmatprep.subr.bf16.mxu1 %v2692_v8 }
 0x524   :  { %2488 = vmatpush3.bf16.msra.mxu1 %v2606_v12 }
 0x525   :  { %2489 = vmatprep.subr.bf16.mxu1 %v2692_v8 }
 0x528   :  { %2490 = vmatpush3.bf16.msra.mxu1 %v2607_v13 }
 0x529   :  { %2491 = vmatprep.subr.bf16.mxu1 %v2692_v8 }
 0x52c   :  { %2492 = vmatpush3.bf16.msra.mxu1 %v2608_v14 }
 0x52d   :  { %2493 = vmatprep.subr.bf16.mxu1 %v2692_v8 }
 0x530   :  { %2494 = vmatpush3.bf16.msra.mxu1 %v2609_v15 }
 0x531   :  { %2547 = vmatprep.subr.bf16.mxu1 %v2692_v8 }
 0x57c   :  { %v585_v28 = vpop.f32.mrb[6].mxu1 }
 0x57d   :  { %v2447_v29 = vpop.f32.mrb[7].mxu1 }
 0x5e1   :  { %v661_v32 = vpop.f32.mrb[6].mxu0 }
 0x5e2   :  { %818 = vrot.lane.b32.xlu0 %v661_v32, %s2699_s17  ;;  %v2452_v33 = vpop.f32.mrb[7].mxu0  ;;  %v2265_v32 = vld [vmem:[%s3206_s13] ss:$0 sm:$0xff] }
 0x5e5   :  { %v737_v35 = vpop.f32.mrb[8].mxu1 }
 0x5e6   :  { %822 = vrot.lane.b32.xlu1 %v737_v35, %s2700_s18  ;;  %v2457_v36 = vpop.f32.mrb[9].mxu1 }
 0x5e9   :  { %v813_v37 = vpop.f32.mrb[8].mxu0 }
 0x5ea   :  { %826 = vrot.lane.b32.xlu0 %v813_v37, %s2701_s19  ;;  %v2462_v38 = vpop.f32.mrb[9].mxu0 }
 0x654   :  { %v819_v39 = vpop.permute.xlu0 %818 }
 0x655   :  { %v829_v41 = vsel %vm158_vm2, %v585_v28, %v819_v39 }
 0x658   :  { %v823_v40 = vpop.permute.xlu1 %822 }
 0x659   :  { %v831_v42 = vsel %vm830_vm3, %v829_v41, %v823_v40 }
 0x65c   :  { %v827_v43 = vpop.permute.xlu0 %826 }
 0x65d   :  { %v833_v44 = vsel %vm832_vm4, %v831_v42, %v827_v43 }
 0x65e   :  { %v834_v45 = vpack.c.bf16 %v833_v44, %v833_v44 }
 0x660   :  { %2468 = vmatmul.mubr.msk.bf16.vlgmr.msra.gmra.mrb[12].mxu0 %vm53_vm0, %v834_v45 }
 0x661   :  { %2475 = vmatprep.mubr.msk.bf16.mxu0 %vm2693_vm1, %v2692_v8  ;;  %2472 = vmatpush3.bf16.msra.mxu0 %v2600_v59  ;;  %v2283_v59 = vld [vmem:[%s3198_s5 + $0x1] ss:$0 sm:$0xff] }
 0x662   :  { %2473 = vmatprep.subr.bf16.mxu0 %v2692_v8 }
 0x733   :  { %v895_v47 = vpop.f32.mrb[12].mxu0 }
 0x734   :  { %v2917_v48 = vadd.f32 %v2255_v46, %v895_v47  ;;  %v2469_v49 = vpop.f32.mrb[13].mxu0  ;;  %v2610_v46 = vld [vmem:[%s3197_s4 + $0x10] sm:$0xff]   ;;  %v2611_v47 = vld [vmem:[%s3197_s4 + $0x18] sm:$0xff]  }
 0x735   :  { %v898_v50 = vpop.f32.mrb[14].mxu0 }
 0x736   :  { %v2921_v51 = vadd.f32 %v2917_v48, %v2783_v0  ;;  %v2470_v52 = vpop.f32.mrb[15].mxu0  ;;  %v2601_v0 = vld [vmem:[%s3203_s10 + $0x8] sm:$0xff]  }
 0x737   :  { %2474 = vmatpush3.bf16.msra.mxu0 %v2601_v0 }
 0x738   :  { %v904_v53 = vsel %vm53_vm0, %v2921_v51, 0.0  ;;  %2499 = vmatprep.subr.bf16.mxu0 %v2692_v8 }
 0x739   :  { %905 = vadd.xlane.f32.xlu1 %v904_v53  ;;  %v2276_v53 = vld [vmem:[%s3195_s2 + $0x1] ss:$0 sm:$0xff] }
 0x7c6   :  { %v906_v54 = vpop.xlane.xlu1 %905 }
 0x7c7   :  { %v907_v55 = vmul.f32 0.03125, %v906_v54 }
 0x7c9   :  { %v908_v56 = vsub.f32 %v2921_v51, %v907_v55  ;;  %v2277_v55 = vld [vmem:[%s3196_s3 + $0x1] ss:$0 sm:$0xff] }
 0x7cb   :  { %v909_v57 = vmul.f32 %v908_v56, %v908_v56 }
 0x7cd   :  { %v910_v58 = vsel %vm53_vm0, %v909_v57, 0.0 }
 0x7ce   :  { %911 = vadd.xlane.f32.xlu0 %v910_v58 }
 0x85b   :  { %v912_v61 = vpop.xlane.xlu0 %911 }
 0x85c   :  { %v913_v62 = vmul.f32 0.03125, %v912_v61 }
 0x85e   :  { %v914_v63 = vadd.f32 1e-05, %v913_v62 }
 0x860   :  { %2642 = vrsqrt.f32 %v914_v63 }
 0x86a   :  { %v2643_v1 = vpop.eup %2642 }
 0x86b   :  { %v916_v3 = vmul.f32 %v2643_v1, %v908_v56 }
 0x86d   :  { %v923_v5 = vmul.f32 %v2259_v2, %v916_v3 }
 0x86f   :  { %v930_v6 = vadd.f32 %v2260_v4, %v923_v5 }
 0x871   :  { %v931_v7 = vpack.c.bf16 %v930_v6, %v930_v6 }
 0x873   :  { %2476 = vmatmul.mubr.msk.bf16.vlgmr.msra.gmra.mrb[16].mxu0 %vm53_vm0, %v931_v7 }
 0x874   :  { %2503 = vmatprep.mubr.msk.bf16.mxu0 %vm2693_vm1, %v2692_v8  ;;  %2500 = vmatpush3.bf16.msra.mxu0 %v2610_v46 }
 0x875   :  { %2501 = vmatprep.subr.bf16.mxu0 %v2692_v8 }
 0x878   :  { %2502 = vmatpush3.bf16.msra.mxu0 %v2611_v47 }
 0x879   :  { %2507 = vmatprep.subr.mxu0 %v2692_v8 }
 0x946   :  { %v992_v17 = vpop.f32.mrb[16].mxu0 }
 0x947   :  { %v993_v18 = vadd.f32 %v2261_v16, %v992_v17  ;;  %v2477_v19 = vpop.f32.mrb[17].mxu0 }
 0x948   :  { %v995_v20 = vpop.f32.mrb[18].mxu0 }
 0x949   :  { %v999_v21 = vmul.f32 0.044715, %v993_v18  ;;  %v2478_v22 = vpop.f32.mrb[19].mxu0  ;;  %v998_v28 = vmul.f32 0.5, %v993_v18 }
 0x94b   :  { %v1000_v23 = vmul.f32 %v999_v21, %v993_v18 }
 0x94d   :  { %v1001_v24 = vmul.f32 %v1000_v23, %v993_v18 }
 0x94f   :  { %v1002_v25 = vadd.f32 %v1001_v24, %v993_v18 }
 0x951   :  { %v1003_v26 = vmul.f32 0.7978846, %v1002_v25 }
 0x953   :  { %2644 = vtanh.f32 %v1003_v26 }
 0x95d   :  { %v2645_v27 = vpop.eup %2644 }
 0x95e   :  { %v1005_v29 = vadd.f32 1.0, %v2645_v27 }
 0x960   :  { %v1006_v30 = vmul.f32 %v1005_v29, %v998_v28 }
 0x962   :  { %v1007_v31 = vpack.c.bf16 %v1006_v30, %v1006_v30 }
 0x964   :  { %2496 = vmatmul.mubr.bf16.vlgmr.msra.gmra.mrb[12].mxu1 %v1007_v31 }
 0x965   :  { %2551 = vmatprep.mubr.msk.bf16.mxu1 %vm2693_vm1, %v2692_v8 }
 0xa37   :  { %v1113_v33 = vpop.f32.mrb[12].mxu1 }
 0xa38   :  { %v2984_v35 = vadd.f32 %v2265_v32, %v1113_v33  ;;  %v2497_v36 = vpop.f32.mrb[13].mxu1 }
 0xa39   :  { %v1116_v37 = vpop.f32.mrb[14].mxu1 }
 0xa3a   :  { %v2988_v38 = vadd.f32 %v2984_v35, %v2921_v51  ;;  %v2498_v39 = vpop.f32.mrb[15].mxu1 }
 0xa3c   :  { %v1137_v40 = vsel %vm53_vm0, %v2988_v38, 0.0 }
 0xa3d   :  { %1138 = vadd.xlane.f32.xlu0 %v1137_v40 }
 0xaca   :  { %v1139_v41 = vpop.xlane.xlu0 %1138 }
 0xacb   :  { %v1140_v42 = vmul.f32 0.03125, %v1139_v41 }
 0xacd   :  { %v1141_v43 = vsub.f32 %v2988_v38, %v1140_v42 }
 0xacf   :  { %v1142_v44 = vmul.f32 %v1141_v43, %v1141_v43 }
 0xad1   :  { %v1143_v45 = vsel %vm53_vm0, %v1142_v44, 0.0 }
 0xad2   :  { %1144 = vadd.xlane.f32.xlu1 %v1143_v45 }
 0xb5f   :  { %v1145_v49 = vpop.xlane.xlu1 %1144 }
 0xb60   :  { %v1146_v50 = vmul.f32 0.03125, %v1145_v49 }
 0xb62   :  { %v1147_v51 = vadd.f32 1e-05, %v1146_v50 }
 0xb64   :  { %2646 = vrsqrt.f32 %v1147_v51 }
 0xb6e   :  { %v2647_v52 = vpop.eup %2646 }
 0xb6f   :  { %v1149_v54 = vmul.f32 %v2647_v52, %v1141_v43 }
 0xb71   :  { %v1156_v56 = vmul.f32 %v2276_v53, %v1149_v54 }
 0xb73   :  { %v1163_v57 = vadd.f32 %v2277_v55, %v1156_v56 }
 0xb75   :  { %v1164_v58 = vpack.c.bf16 %v1163_v57, %v1163_v57 }
 0xb77   :  { %2504 = vmatmul.mubr.msk.bf16.vlgmr.msra.gmra.mrb[20].mxu0 %vm53_vm0, %v1164_v58 }
 0xb78   :  { %2509 = vmatprep.mubr.msk.f32.mxu0 %vm2693_vm1, %v2692_v8 }
 0xc4a   :  { %v1227_v0 = vpop.f32.mrb[20].mxu0 }
 0xc4b   :  { %v1228_v60 = vadd.f32 %v2283_v59, %v1227_v0  ;;  %v2505_v61 = vpop.f32.mrb[21].mxu0 }
 0xc4c   :  { %v1230_v62 = vpop.f32.mrb[22].mxu0 }
 0xc4d   :  { %1236 = vrot.lane.b32.xlu1 %v1228_v60, %s2696_s26  ;;  %1234 = vrot.lane.b32.xlu0 %v1228_v60, %s2695_s25  ;;  %v2506_v63 = vpop.f32.mrb[23].mxu0 }
 0xc51   :  { %1238 = vrot.lane.b32.xlu1 %v1228_v60, %s2694_s24  ;;  %1240 = vrot.lane.b32.xlu0 %v1228_v60, %s2697_s27 }
 0xcbf   :  { %v3018_v1 = vpop.permute.xlu1 %1236  ;;  %v3020_v2 = vpop.permute.xlu0 %1234 }
 0xcc0   :  { %1392 = vrot.lane.b32.xlu0 %v3018_v1, %s2697_s27  ;;  %1316 = vrot.lane.b32.xlu1 %v3020_v2, %s2697_s27 }
 0xcc3   :  { %v3026_v3 = vpop.permute.xlu1 %1238  ;;  %v1241_v4 = vpop.permute.xlu0 %1240 }
 0xcc4   :  { %1468 = vrot.lane.b32.xlu1 %v3026_v3, %s2697_s27  ;;  %2508 = vmatpush3.xpose.msk.msra.mxu0 %vm158_vm2, %v1241_v4 }
 0xcc5   :  { %2512 = vmatprep.subr.mxu0 %v2692_v8 }
 0xcc7   :  { %2510 = vmatmul.mubr.msk.f32.vlgmr.msra.gmra.mrb[10].mxu0 %vm158_vm2, %v1228_v60 }
 0xcc8   :  { %2514 = vmatprep.mubr.msk.f32.mxu0 %vm2693_vm1, %v2692_v8 }
 0xd32   :  { %v1317_v5 = vpop.permute.xlu1 %1316  ;;  %v1393_v6 = vpop.permute.xlu0 %1392 }
 0xd33   :  { %2513 = vmatpush3.xpose.msk.msra.mxu0 %vm158_vm2, %v1317_v5 }
 0xd34   :  { %2517 = vmatprep.subr.mxu0 %v2692_v8 }
 0xd36   :  { %2515 = vmatmul.mubr.msk.f32.vlgmr.msra.gmra.mrb[24].mxu0 %vm158_vm2, %v3020_v2  ;;  %v1469_v7 = vpop.permute.xlu1 %1468 }
 0xd37   :  { %2518 = vmatpush3.xpose.msk.msra.mxu0 %vm158_vm2, %v1393_v6  ;;  %2519 = vmatprep.mubr.msk.f32.mxu0 %vm2693_vm1, %v2692_v8  ;;  %v2612_v6 = vld [vmem:[%s3199_s6 + $0x10] sm:$0xff]  }
 0xd38   :  { %2522 = vmatprep.subr.mxu0 %v2692_v8  ;;  %2548 = vmatpush3.bf16.msra.mxu1 %v2612_v6 }
 0xd39   :  { %2549 = vmatprep.subr.bf16.mxu1 %v2692_v8 }
 0xd3a   :  { %2520 = vmatmul.mubr.msk.f32.vlgmr.msra.gmra.mrb[26].mxu0 %vm158_vm2, %v3018_v1 }
 0xd3b   :  { %2523 = vmatpush3.xpose.msk.msra.mxu0 %vm158_vm2, %v1469_v7  ;;  %2524 = vmatprep.mubr.msk.f32.mxu0 %vm2693_vm1, %v2692_v8  ;;  %v2613_v7 = vld [vmem:[%s3199_s6 + $0x18] sm:$0xff]  }
 0xd3c   :  { %2527 = vmatprep.subr.mxu0 %v2692_v8  ;;  %2550 = vmatpush3.bf16.msra.mxu1 %v2613_v7 }
 0xd3d   :  { %2563 = vmatprep.subr.bf16.mxu1 %v2692_v8 }
 0xd3e   :  { %2525 = vmatmul.mubr.msk.f32.vlgmr.msra.gmra.mrb[28].mxu0 %vm158_vm2, %v3026_v3 }
 0xd3f   :  { %2529 = vmatprep.mubr.msk.f32.mxu0 %vm2693_vm1, %v2692_v8 }
 0xd9a   :  { %v1312_v9 = vpop.f32.mrb[10].mxu0 }
 0xd9b   :  { %v1544_v10 = vmul.f32 0.35355338, %v1312_v9  ;;  %v2511_v11 = vpop.f32.mrb[11].mxu0 }
 0xd9d   :  { %v1548_v12 = vadd.f32 %v1544_v10, %v2860_v34 }
 0xd9f   :  { %v1552_v13 = vsel %vm158_vm2, %v1548_v12, -inf }
 0xda0   :  { %1553 = vmax.xlane.f32.xlu0 %v1552_v13 }
 0xe09   :  { %v1388_v14 = vpop.f32.mrb[24].mxu0 }
 0xe0a   :  { %v1545_v15 = vmul.f32 0.35355338, %v1388_v14  ;;  %v2516_v16 = vpop.f32.mrb[25].mxu0 }
 0xe0c   :  { %v1549_v17 = vadd.f32 %v1545_v15, %v2860_v34 }
 0xe0d   :  { %v1464_v18 = vpop.f32.mrb[26].mxu0 }
 0xe0e   :  { %v1546_v19 = vmul.f32 0.35355338, %v1464_v18  ;;  %v2521_v20 = vpop.f32.mrb[27].mxu0  ;;  %v1555_v21 = vsel %vm158_vm2, %v1549_v17, -inf }
 0xe0f   :  { %1556 = vmax.xlane.f32.xlu1 %v1555_v21 }
 0xe10   :  { %v1550_v22 = vadd.f32 %v1546_v19, %v2860_v34 }
 0xe11   :  { %v1540_v23 = vpop.f32.mrb[28].mxu0 }
 0xe12   :  { %v1547_v24 = vmul.f32 0.35355338, %v1540_v23  ;;  %v2526_v25 = vpop.f32.mrb[29].mxu0  ;;  %v1558_v26 = vsel %vm158_vm2, %v1550_v22, -inf }
 0xe13   :  { %1559 = vmax.xlane.f32.xlu0 %v1558_v26 }
 0xe14   :  { %v1551_v27 = vadd.f32 %v1547_v24, %v2860_v34 }
 0xe16   :  { %v1561_v28 = vsel %vm158_vm2, %v1551_v27, -inf }
 0xe17   :  { %1562 = vmax.xlane.f32.xlu0 %v1561_v28 }
 0xe20   :  { %1596 = vrot.lane.b32.xlu1 %v1228_v60, %s2698_s1 }
 0xe2d   :  { %v1554_v29 = vpop.xlane.xlu0 %1553 }
 0xe2e   :  { %v1564_v30 = vsub.f32 %v1548_v12, %v1554_v29 }
 0xe30   :  { %v1568_v31 = vmul.f32 1.442695, %v1564_v30 }
 0xe32   :  { %2648 = vpow2.f32 %v1568_v31 }
 0xe3c   :  { %v2649_v32 = vpop.eup %2648 }
 0xe3d   :  { %v1576_v33 = vsel %vm158_vm2, %v2649_v32, 0.0 }
 0xe44   :  { %1577 = vadd.xlane.f32.xlu1 %v1576_v33 }
 0xe9c   :  { %v1557_v36 = vpop.xlane.xlu1 %1556 }
 0xe9d   :  { %v1565_v37 = vsub.f32 %v1549_v17, %v1557_v36 }
 0xe9f   :  { %v1570_v39 = vmul.f32 1.442695, %v1565_v37  ;;  %v2614_v37 = vld [vmem:[%s3203_s10 + $0x10] sm:$0xff]  }
 0xea0   :  { %v1597_v40 = vpop.permute.xlu1 %1596  ;;  %v1560_v41 = vpop.xlane.xlu0 %1559 }
 0xea1   :  { %2650 = vpow2.f32 %v1570_v39  ;;  %v1566_v34 = vsub.f32 %v1550_v22, %v1560_v41  ;;  %2528 = vmatpush3.msra.mxu0 %v1597_v40  ;;  %v2304_v22 = vld [vmem:[%s3200_s7 + $0x1] ss:$0 sm:$0xff]  ;;  %s2702_s7 = smov 32   ;;  %v2615_v39 = vld [vmem:[%s3203_s10 + $0x18] sm:$0xff]  }
 0xea2   :  { %2532 = vmatprep.subr.mxu0 %v2692_v8  ;;  %v2616_v40 = vld [vmem:[%s3205_s12 + $0x40] sm:$0xff]  }
 0xea3   :  { %v1572_v42 = vmul.f32 1.442695, %v1566_v34 }
 0xea4   :  { %v1563_v43 = vpop.xlane.xlu0 %1562 }
 0xea5   :  { %2652 = vpow2.f32 %v1572_v42  ;;  %v1567_v44 = vsub.f32 %v1551_v27, %v1563_v43  ;;  %v2310_v43 = vld [vmem:[%s3201_s8 + $0x1] ss:$0 sm:$0xff] }
 0xea7   :  { %v1574_v45 = vmul.f32 1.442695, %v1567_v44 }
 0xea9   :  { %2654 = vpow2.f32 %v1574_v45  ;;  %v2311_v45 = vld [vmem:[%s3202_s9 + $0x1] ss:$0 sm:$0xff] }
 0xeab   :  { %v2651_v46 = vpop.eup %2650 }
 0xeac   :  { %v1579_v47 = vsel %vm158_vm2, %v2651_v46, 0.0 }
 0xead   :  { %1580 = vadd.xlane.f32.xlu0 %v1579_v47 }
 0xeaf   :  { %v2653_v49 = vpop.eup %2652 }
 0xeb0   :  { %v1582_v50 = vsel %vm158_vm2, %v2653_v49, 0.0 }
 0xeb1   :  { %1583 = vadd.xlane.f32.xlu1 %v1582_v50  ;;  %v2617_v50 = vld [vmem:[%s3205_s12 + $0x48] sm:$0xff]  }
 0xeb3   :  { %v2655_v51 = vpop.eup %2654 }
 0xeb4   :  { %v1585_v52 = vsel %vm158_vm2, %v2655_v51, 0.0 }
 0xeb5   :  { %1586 = vadd.xlane.f32.xlu0 %v1585_v52  ;;  %v2619_v52 = vld [vmem:[%s3205_s12 + $0x58] sm:$0xff]  }
 0xec2   :  { %1748 = vrot.lane.b32.xlu1 %v3018_v1, %s2698_s1 }
 0xec6   :  { %1824 = vrot.lane.b32.xlu1 %v3026_v3, %s2698_s1 }
 0xecb   :  { %1672 = vrot.lane.b32.xlu0 %v3020_v2, %s2698_s1 }
 0xed1   :  { %v1578_v53 = vpop.xlane.xlu1 %1577 }
 0xed2   :  { %2656 = vrcp.f32 %v1578_v53  ;;  %v2620_v53 = vld [vmem:[%s3205_s12 + $0x60] sm:$0xff]  }
 0xedc   :  { %v2657_v54 = vpop.eup %2656 }
 0xedd   :  { %v1589_v55 = vmul.f32 %v2657_v54, %v2649_v32  ;;  %v2621_v54 = vld [vmem:[%s3205_s12 + $0x68] sm:$0xff]  }
 0xedf   :  { %2530 = vmatmul.mubr.msk.f32.vlgmr.msra.gmra.mrb[30].mxu0 %vm158_vm2, %v1589_v55  ;;  %v2622_v55 = vld [vmem:[%s3205_s12 + $0x70] sm:$0xff]  }
 0xee0   :  { %2534 = vmatprep.mubr.msk.f32.mxu0 %vm2693_vm1, %v2692_v8 }
 0xf3a   :  { %v1581_v56 = vpop.xlane.xlu0 %1580 }
 0xf3b   :  { %2658 = vrcp.f32 %v1581_v56  ;;  %v2623_v56 = vld [vmem:[%s3205_s12 + $0x78] sm:$0xff]  }
 0xf3e   :  { %v1584_v57 = vpop.xlane.xlu1 %1583 }
 0xf3f   :  { %2660 = vrcp.f32 %v1584_v57  ;;  %v2317_v57 = vld [vmem:[%s3204_s11 + $0x1] ss:$0 sm:$0xff]  ;;  %s2703_s11 = smov [#allocation2]  }
 0xf42   :  { %v1587_v58 = vpop.xlane.xlu0 %1586  ;;  %v1749_v60 = vpop.permute.xlu1 %1748 }
 0xf43   :  { %2662 = vrcp.f32 %v1587_v58 }
 0xf45   :  { %v2659_v59 = vpop.eup %2658 }
 0xf46   :  { %v1591_v0 = vmul.f32 %v2659_v59, %v2651_v46  ;;  %v1673_v61 = vpop.permute.xlu0 %1672  ;;  %v1825_v1 = vpop.permute.xlu1 %1824 }
 0xf47   :  { %2533 = vmatpush3.msra.mxu0 %v1673_v61 }
 0xf48   :  { %2535 = vmatmul.mubr.msk.f32.vlgmr.msra.gmra.mrb[32].mxu0 %vm158_vm2, %v1591_v0  ;;  %2537 = vmatprep.subr.mxu0 %v2692_v8 }
 0xf49   :  { %v2661_v62 = vpop.eup %2660  ;;  %2538 = vmatpush3.msra.mxu0 %v1749_v60  ;;  %2539 = vmatprep.mubr.msk.f32.mxu0 %vm2693_vm1, %v2692_v8 }
 0xf4a   :  { %v1593_v63 = vmul.f32 %v2661_v62, %v2653_v49  ;;  %2542 = vmatprep.subr.mxu0 %v2692_v8 }
 0xf4c   :  { %2540 = vmatmul.mubr.msk.f32.vlgmr.msra.gmra.mrb[34].mxu0 %vm158_vm2, %v1593_v63 }
 0xf4d   :  { %v2663_v2 = vpop.eup %2662  ;;  %2543 = vmatpush3.msra.mxu0 %v1825_v1  ;;  %2544 = vmatprep.mubr.msk.f32.mxu0 %vm2693_vm1, %v2692_v8 }
 0xf4e   :  { %v1595_v3 = vmul.f32 %v2663_v2, %v2655_v51  ;;  %2555 = vmatprep.subr.bf16.mxu0 %v2692_v8  ;;  %v2618_v51 = vld [vmem:[%s3205_s12 + $0x50] sm:$0xff]  }
 0xf50   :  { %2545 = vmatmul.mubr.msk.f32.vlgmr.msra.gmra.mrb[36].mxu0 %vm158_vm2, %v1595_v3 }
 0xf51   :  { %2559 = vmatprep.mubr.msk.bf16.mxu0 %vm2693_vm1, %v2692_v8  ;;  %2556 = vmatpush3.bf16.msra.mxu0 %v2614_v37 }
 0xf52   :  { %2557 = vmatprep.subr.bf16.mxu0 %v2692_v8 }
 0xf55   :  { %2558 = vmatpush3.bf16.msra.mxu0 %v2615_v39 }
 0xfb2   :  { %v1668_v4 = vpop.f32.mrb[30].mxu0 }
 0xfb3   :  { %v2531_v5 = vpop.f32.mrb[31].mxu0 }
0x101b   :  { %v1744_v9 = vpop.f32.mrb[32].mxu0 }
0x101c   :  { %1901 = vrot.lane.b32.xlu0 %v1744_v9, %s2699_s17  ;;  %v2536_v10 = vpop.f32.mrb[33].mxu0  ;;  %v2338_v9 = vld [vmem:[%s3206_s13 + $0x1] ss:$0 sm:$0xff]  ;;  %s2226_s13 = sshll.u32 %s2703_s11, 4  ;;  %s2227_s13 = int_to_ptr.vmem [resolvable:$true] %s2226_s13 }
0x101d   :  { %p2673_p1 = scmp.lt.s32.totalorder %s2227_s13, %s2227_s13 }
0x101f   :  { %v1820_v11 = vpop.f32.mrb[34].mxu0 }
0x1020   :  { %1905 = vrot.lane.b32.xlu1 %v1820_v11, %s2700_s18  ;;  %v2541_v12 = vpop.f32.mrb[35].mxu0 }
0x1023   :  { %v1896_v13 = vpop.f32.mrb[36].mxu0 }
0x1024   :  { %1909 = vrot.lane.b32.xlu0 %v1896_v13, %s2701_s19  ;;  %v2546_v14 = vpop.f32.mrb[37].mxu0 }
0x108e   :  { %v1902_v15 = vpop.permute.xlu0 %1901 }
0x108f   :  { %v1912_v17 = vsel %vm158_vm2, %v1668_v4, %v1902_v15 }
0x1092   :  { %v1906_v16 = vpop.permute.xlu1 %1905 }
0x1093   :  { %v1913_v18 = vsel %vm830_vm3, %v1912_v17, %v1906_v16 }
0x1096   :  { %v1910_v19 = vpop.permute.xlu0 %1909 }
0x1097   :  { %v1914_v20 = vsel %vm832_vm4, %v1913_v18, %v1910_v19 }
0x1098   :  { %v1915_v21 = vpack.c.bf16 %v1914_v20, %v1914_v20 }
0x109a   :  { %2552 = vmatmul.mubr.msk.bf16.vlgmr.msra.gmra.mrb[16].mxu1 %vm53_vm0, %v1915_v21 }
0x109b   :  { %2579 = vmatprep.mubr.msk.bf16.mxu1 %vm2693_vm1, %v2692_v8  ;;  %2564 = vmatpush3.bf16.msra.mxu1 %v2616_v40 }
0x109c   :  { %2565 = vmatprep.subr.bf16.mxu1 %v2692_v8 }
0x109f   :  { %2566 = vmatpush3.bf16.msra.mxu1 %v2617_v50 }
0x10a0   :  { %2567 = vmatprep.subr.bf16.mxu1 %v2692_v8 }
0x10a3   :  { %2568 = vmatpush3.bf16.msra.mxu1 %v2618_v51 }
0x10a4   :  { %2569 = vmatprep.subr.bf16.mxu1 %v2692_v8 }
0x10a7   :  { %2570 = vmatpush3.bf16.msra.mxu1 %v2619_v52 }
0x10a8   :  { %2571 = vmatprep.subr.bf16.mxu1 %v2692_v8 }
0x10ab   :  { %2572 = vmatpush3.bf16.msra.mxu1 %v2620_v53 }
0x10ac   :  { %2573 = vmatprep.subr.bf16.mxu1 %v2692_v8 }
0x10af   :  { %2574 = vmatpush3.bf16.msra.mxu1 %v2621_v54 }
0x10b0   :  { %2575 = vmatprep.subr.bf16.mxu1 %v2692_v8 }
0x10b3   :  { %2576 = vmatpush3.bf16.msra.mxu1 %v2622_v55 }
0x10b4   :  { %2577 = vmatprep.subr.bf16.mxu1 %v2692_v8 }
0x10b7   :  { %2578 = vmatpush3.bf16.msra.mxu1 %v2623_v56 }
0x116d   :  { %v1978_v23 = vpop.f32.mrb[16].mxu1 }
0x116e   :  { %v3108_v24 = vadd.f32 %v2304_v22, %v1978_v23  ;;  %v2553_v25 = vpop.f32.mrb[17].mxu1 }
0x116f   :  { %v1981_v26 = vpop.f32.mrb[18].mxu1 }
0x1170   :  { %v3112_v27 = vadd.f32 %v3108_v24, %v2988_v38  ;;  %v2554_v28 = vpop.f32.mrb[19].mxu1 }
0x1172   :  { %v1989_v29 = vsel %vm53_vm0, %v3112_v27, 0.0 }
0x1173   :  { %1990 = vadd.xlane.f32.xlu1 %v1989_v29 }
0x1200   :  { %v1991_v30 = vpop.xlane.xlu1 %1990 }
0x1201   :  { %v1992_v31 = vmul.f32 0.03125, %v1991_v30 }
0x1203   :  { %v1993_v32 = vsub.f32 %v3112_v27, %v1992_v31 }
0x1205   :  { %v1994_v33 = vmul.f32 %v1993_v32, %v1993_v32 }
0x1207   :  { %v1995_v36 = vsel %vm53_vm0, %v1994_v33, 0.0 }
0x1208   :  { %1996 = vadd.xlane.f32.xlu0 %v1995_v36 }
0x121e   :  { %1121 = vrot.lane.b32.xlu0 %v2984_v35, %s2702_s7 }
0x1295   :  { %v1997_v35 = vpop.xlane.xlu0 %1996 }
0x1296   :  { %v1998_v41 = vmul.f32 0.03125, %v1997_v35 }
0x1298   :  { %v1999_v34 = vadd.f32 1e-05, %v1998_v41 }
0x1299   :  { %v1122_v16 = vpop.permute.xlu0 %1121 }
0x129a   :  { %2664 = vrsqrt.f32 %v1999_v34  ;;  %v1128_v21 = vsel %vm53_vm0, %v2917_v48, %v1122_v16 }
0x12a4   :  { %v2665_v42 = vpop.eup %2664 }
0x12a5   :  { %v2001_v44 = vmul.f32 %v2665_v42, %v1993_v32 }
0x12a7   :  { %v2008_v46 = vmul.f32 %v2310_v43, %v2001_v44 }
0x12a9   :  { %v2015_v47 = vadd.f32 %v2311_v45, %v2008_v46 }
0x12ab   :  { %v2016_v49 = vpack.c.bf16 %v2015_v47, %v2015_v47 }
0x12ad   :  { %2560 = vmatmul.mubr.msk.bf16.vlgmr.msra.gmra.mrb[40].mxu0 %vm53_vm0, %v2016_v49 }
0x1380   :  { %v2079_v58 = vpop.f32.mrb[40].mxu0 }
0x1381   :  { %v2080_v59 = vadd.f32 %v2317_v57, %v2079_v58  ;;  %v2561_v0 = vpop.f32.mrb[41].mxu0 }
0x1382   :  { %v2082_v60 = vpop.f32.mrb[42].mxu0 }
0x1383   :  { %v2086_v61 = vmul.f32 0.044715, %v2080_v59  ;;  %v2562_v62 = vpop.f32.mrb[43].mxu0  ;;  %v2085_v5 = vmul.f32 0.5, %v2080_v59 }
0x1385   :  { %v2087_v63 = vmul.f32 %v2086_v61, %v2080_v59 }
0x1387   :  { %v2088_v1 = vmul.f32 %v2087_v63, %v2080_v59 }
0x1389   :  { %v2089_v2 = vadd.f32 %v2088_v1, %v2080_v59 }
0x138b   :  { %v2090_v3 = vmul.f32 0.7978846, %v2089_v2 }
0x138d   :  { %2666 = vtanh.f32 %v2090_v3 }
0x1397   :  { %v2667_v4 = vpop.eup %2666 }
0x1398   :  { %v2092_v6 = vadd.f32 1.0, %v2667_v4 }
0x139a   :  { %v2093_v8 = vmul.f32 %v2092_v6, %v2085_v5 }
0x139c   :  { %v2094_v7 = vpack.c.bf16 %v2093_v8, %v2093_v8 }
0x139e   :  { %2580 = vmatmul.mubr.bf16.vlgmr.msra.gmra.mrb[20].mxu1 %v2094_v7 }
0x1471   :  { %v2202_v10 = vpop.f32.mrb[20].mxu1 }
0x1472   :  { %v2203_v11 = vadd.f32 %v2338_v9, %v2202_v10  ;;  %v2581_v12 = vpop.f32.mrb[21].mxu1 }
0x1473   :  { %v2205_v13 = vpop.f32.mrb[22].mxu1 }
0x1474   :  { %v2208_v14 = vadd.f32 %v2203_v11, %v3112_v27  ;;  %2210 = vrot.lane.b32.xlu1 %v2203_v11, %s2702_s7  ;;  %v2582_v15 = vpop.f32.mrb[23].mxu1 }
0x1476   :  { %2214 = vrot.lane.b32.xlu0 %v2208_v14, %s2698_s1 }
0x1478   :  { %1125 = vrot.lane.b32.xlu1 %v2988_v38, %s2698_s1  ;;  %s2668_s1 = scalar_lea.vmem %s2227_s13, 256 }
0x1479   :  { %p2669_p0 = scmp.ne.s32.totalorder %s2227_s13, %s2668_s1  ;;  %p2674_p2 = scmp.lt.s32.totalorder %s2668_s1, %s2668_s1 }
0x147b   :  { %p2675_p3 = por %p2674_p2, %p2673_p1 }
0x147d   :  { %p2676_p4 = pnand %p2675_p3, %p2669_p0 }
0x14e6   :  { %v2211_v17 = vpop.permute.xlu1 %2210 }
0x14e7   :  { %v2217_v18 = vsel %vm53_vm0, %v3108_v24, %v2211_v17 }
0x14e8   :  { %v2215_v19 = vpop.permute.xlu0 %2214 }
0x14e9   :  { %v2218_v20 = vsel %vm1129_vm5, %v2217_v18, %v2215_v19 }
0x14ea   :  { %2220 = vst.msk [vmem:[#allocation2 + $0x8] sm:$0xff] %vm1131_vm6, %v2218_v20  ;;  %v1126_v22 = vpop.permute.xlu1 %1125 }
0x14eb   :  { %v1130_v23 = vsel %vm1129_vm5, %v1128_v21, %v1126_v22 }
0x14ec   :  { %1132 = vst.msk [vmem:[#allocation2] sm:$0xff] %vm1131_vm6, %v1130_v23 }
0x14ed   :  { %2679 = shalt.err (!%p2676_p4)
}
0x14ee   :  { %s2680_s0 = scalar_lea.hbm %s3207_s14, 256 }
0x14ef   :  { %p2681_p5 = scmp.ne.s32.totalorder %s3207_s14, %s2680_s0  ;;  %p2684_p6 = scmp.lt.u32.totalorder %s2680_s0, %s3207_s14 }
0x14f1   :  { %p2686_p7 = pnand %p2684_p6, %p2681_p5 }
0x14f3   :  { %2689 = shalt.err (!%p2686_p7)
}
0x14f4   :  { %s2704_s23 = smov 128  }
0x14f5   :  { %2232 = dma.vmem_to_hbm [thread:$0]  %s2227_s13, 256, %s3207_s14, [#allocation3], %s2704_s23, %s2704_s23, %s2699_s17  }
0x14f6   :  { %2690 = dma.done.wait [#allocation3], 256  }
0x14f7   :  { %2691 = vsyncadd [#allocation3], 4294967040 }
0x14f8   :  { %2236 = vsyncpa [#allocation3], 1 }

</bundles_post_ra>
